<compile_context>
chip_gen: v6e
topology: v6e:2x2x1
jax: 0.10.0
libtpu: 0.0.40
codegen_flags: <defaults>
</compile_context>

<pallas_src>
import math

import jax
import jax.numpy as jnp
from jax.experimental import pallas as pl
from jax.experimental.pallas import tpu as pltpu

NUM_HEADS = 4
LN_EPS = 1e-5


def _layernorm(x, w, b):
    # PyTorch LayerNorm: biased variance, eps inside rsqrt.
    mean = jnp.mean(x, axis=-1, keepdims=True)
    xc = x - mean
    var = jnp.mean(xc * xc, axis=-1, keepdims=True)
    inv = jax.lax.rsqrt(var + LN_EPS)
    return xc * inv * w + b


def self_attention_kernel(
    x_ref,
    ln1_w_ref, ln1_b_ref,
    w_qkv_ref, b_qkv_ref,
    wo_ref, bo_ref,
    ln2_w_ref, ln2_b_ref,
    wff_ref, bff_ref,
    out_ref,
):
    x = x_ref[0].astype(jnp.float32)            # (N, C)
    N, C = x.shape
    Dh = C // NUM_HEADS

    # ---- first LayerNorm (self.ln), f32 VPU math ----
    x_ln = _layernorm(x, ln1_w_ref[...], ln1_b_ref[...])

    # ---- fused QKV in-projection: one MXU launch, bf16 operands, f32 accum.
    #      The 1/sqrt(Dh) scale is pre-folded into the Q columns of
    #      w_qkv / b_qkv by the wrapper (zero in-kernel cost). ----
    qkv = jnp.dot(x_ln.astype(jnp.bfloat16), w_qkv_ref[...],
                  preferred_element_type=jnp.float32) + b_qkv_ref[...]
    qkv_bf = qkv.astype(jnp.bfloat16)           # (N, 3C)

    wo = wo_ref[...]                            # (C, C) bf16

    # ---- per-head attention with the output projection fused into the loop:
    #      attn_acc += softmax(q_h k_h^T) v_h @ Wo[h*Dh:(h+1)*Dh, :]
    #      -> no lane-axis concat, prob matrix dies per head. ----
    attn_acc = jnp.zeros((N, C), jnp.float32)
    for h in range(NUM_HEADS):
        lo = h * Dh
        q_h = qkv_bf[:, lo:lo + Dh]                       # (N, Dh), pre-scaled
        k_h = qkv_bf[:, C + lo:C + lo + Dh]
        v_h = qkv_bf[:, 2 * C + lo:2 * C + lo + Dh]

        s = jnp.dot(q_h, k_h.T, preferred_element_type=jnp.float32)   # (N, N)
        s = s - jnp.max(s, axis=-1, keepdims=True)
        p = jnp.exp(s)
        # EUP approximate reciprocal instead of a multi-instruction VPU divide.
        p = p * pl.reciprocal(jnp.sum(p, axis=-1, keepdims=True), approx=True)

        ctx_h = jnp.dot(p.astype(jnp.bfloat16), v_h,
                        preferred_element_type=jnp.float32)           # (N, Dh)
        attn_acc = attn_acc + jnp.dot(ctx_h.astype(jnp.bfloat16),
                                      wo[lo:lo + Dh, :],
                                      preferred_element_type=jnp.float32)

    # ---- out-proj bias + residual ----
    attn = attn_acc + bo_ref[...] + x

    # ---- ff_self: LayerNorm -> Linear -> LogSigmoid, plus residual ----
    hdn = _layernorm(attn, ln2_w_ref[...], ln2_b_ref[...])
    hdn = jnp.dot(hdn.astype(jnp.bfloat16), wff_ref[...],
                  preferred_element_type=jnp.float32) + bff_ref[...]
    hdn = -jnp.logaddexp(0.0, -hdn)             # logsigmoid(z) = -softplus(-z)
    out_ref[0] = (hdn + attn).astype(out_ref.dtype)
    # TODO(synk): for large N (>= ~1024) add a query-tile grid axis with
    # flash-style online softmax so the full (N, N) scores never materialize
    # (needed under v5e's 16 MiB scoped default / v7x's 64 MiB total VMEM).


def init_params(key, channels):
    """Deterministic synthetic parameters matching the PyTorch module shapes."""
    c = channels
    ks = jax.random.split(key, 6)
    std = 1.0 / math.sqrt(c)
    # nn.MultiheadAttention: in_proj_weight (3C, C), in_proj_bias (3C),
    #                        out_proj.weight (C, C), out_proj.bias (C)
    in_proj_w = jax.random.normal(ks[0], (3 * c, c), jnp.float32) * std
    in_proj_b = jax.random.normal(ks[1], (3 * c,), jnp.float32) * std
    out_proj_w = jax.random.normal(ks[2], (c, c), jnp.float32) * std
    out_proj_b = jax.random.normal(ks[3], (c,), jnp.float32) * std
    # nn.LayerNorm([C]) x2
    ln1_w = jnp.ones((c,), jnp.float32)
    ln1_b = jnp.zeros((c,), jnp.float32)
    ln2_w = jnp.ones((c,), jnp.float32)
    ln2_b = jnp.zeros((c,), jnp.float32)
    # nn.Linear(C, C)
    ff_w = jax.random.normal(ks[4], (c, c), jnp.float32) * std
    ff_b = jax.random.normal(ks[5], (c,), jnp.float32) * std
    return dict(
        ln1_w=ln1_w, ln1_b=ln1_b,
        in_proj_w=in_proj_w, in_proj_b=in_proj_b,
        out_proj_w=out_proj_w, out_proj_b=out_proj_b,
        ln2_w=ln2_w, ln2_b=ln2_b,
        ff_w=ff_w, ff_b=ff_b,
    )


def _kernel_weights(params, c):
    """Split / transpose PyTorch-layout weights into kernel-friendly operands.

    - Q|K|V fused into one (C, 3C) bf16 matmul operand, with the 1/sqrt(Dh)
      attention scale pre-folded into the Q block (weights AND bias).
    - Matmul weights shipped as bf16 (half the DMA / resident VMEM); biases
      and LayerNorm params stay f32 since they feed f32 VPU math.
    """
    dh = c // NUM_HEADS
    scale = 1.0 / math.sqrt(dh)
    wq = params["in_proj_w"][0 * c:1 * c].T * scale       # (C, C): y = x @ Wq^T
    wk = params["in_proj_w"][1 * c:2 * c].T
    wv = params["in_proj_w"][2 * c:3 * c].T
    w_qkv = jnp.concatenate([wq, wk, wv], axis=1).astype(jnp.bfloat16)   # (C, 3C)
    b_qkv = jnp.concatenate([
        params["in_proj_b"][0 * c:1 * c] * scale,
        params["in_proj_b"][1 * c:2 * c],
        params["in_proj_b"][2 * c:3 * c],
    ]).reshape(1, 3 * c).astype(jnp.float32)
    wo = params["out_proj_w"].T.astype(jnp.bfloat16)
    bo = params["out_proj_b"].reshape(1, c).astype(jnp.float32)
    wff = params["ff_w"].T.astype(jnp.bfloat16)
    bff = params["ff_b"].reshape(1, c).astype(jnp.float32)
    return [
        params["ln1_w"].reshape(1, c), params["ln1_b"].reshape(1, c),
        w_qkv, b_qkv, wo, bo,
        params["ln2_w"].reshape(1, c), params["ln2_b"].reshape(1, c),
        wff, bff,
    ]


def self_attention_pallas(x_nchw, params):
    B, C, H, W = x_nchw.shape
    N = H * W
    # NCHW -> (B, N, C)  (== x.view(B, C, -1).swapaxes(1, 2))
    x_seq = jnp.transpose(x_nchw.reshape(B, C, N), (0, 2, 1))

    weights = _kernel_weights(params, C)

    def full_spec(arr):
        nd = arr.ndim
        return pl.BlockSpec(arr.shape, lambda b, _nd=nd: (0,) * _nd)

    in_specs = [pl.BlockSpec((1, N, C), lambda b: (b, 0, 0))] + [
        full_spec(w) for w in weights
    ]

    out_seq = pl.pallas_call(
        self_attention_kernel,
        out_shape=jax.ShapeDtypeStruct((B, N, C), x_seq.dtype),
        grid_spec=pltpu.PrefetchScalarGridSpec(
            num_scalar_prefetch=0,
            grid=(B,),
            in_specs=in_specs,
            out_specs=pl.BlockSpec((1, N, C), lambda b: (b, 0, 0)),
        ),
        compiler_params=pltpu.CompilerParams(
            # Batch axis stays parallel so v7x's two TensorCores both get work.
            dimension_semantics=("parallel",),
            # Explicit scoped-VMEM budget (within physical VMEM on v5e/v6e/v7x).
            vmem_limit_bytes=64 * 1024 * 1024,
        ),
    )(x_seq, *weights)

    # (B, N, C) -> NCHW  (== swapaxes(2,1).view(B, C, H, W))
    return jnp.transpose(out_seq, (0, 2, 1)).reshape(B, C, H, W)


def self_attention_ref(x_nchw, params):
    """Pure-JAX f32 reference mirroring the PyTorch forward exactly."""
    B, C, H, W = x_nchw.shape
    N = H * W
    x = jnp.transpose(x_nchw.reshape(B, C, N), (0, 2, 1))           # (B, N, C)

    def ln(y, w, b):
        m = jnp.mean(y, axis=-1, keepdims=True)
        v = jnp.mean((y - m) ** 2, axis=-1, keepdims=True)
        return (y - m) / jnp.sqrt(v + LN_EPS) * w + b

    x_ln = ln(x, params["ln1_w"], params["ln1_b"])
    qkv = jnp.einsum("bnc,dc->bnd", x_ln, params["in_proj_w"]) + params["in_proj_b"]
    q, k, v = jnp.split(qkv, 3, axis=-1)
    Dh = C // NUM_HEADS

    def split_heads(t):
        return t.reshape(B, N, NUM_HEADS, Dh).transpose(0, 2, 1, 3)  # (B, H, N, Dh)

    qh, kh, vh = split_heads(q), split_heads(k), split_heads(v)
    s = jnp.einsum("bhqd,bhkd->bhqk", qh, kh) / math.sqrt(Dh)
    p = jax.nn.softmax(s, axis=-1)
    ctx = jnp.einsum("bhqk,bhkd->bhqd", p, vh).transpose(0, 2, 1, 3).reshape(B, N, C)
    attn = jnp.einsum("bnc,dc->bnd", ctx, params["out_proj_w"]) + params["out_proj_b"]
    attn = attn + x

    h = ln(attn, params["ln2_w"], params["ln2_b"])
    h = jnp.einsum("bnc,dc->bnd", h, params["ff_w"]) + params["ff_b"]
    h = jax.nn.log_sigmoid(h)
    out = h + attn
    return jnp.transpose(out, (0, 2, 1)).reshape(B, C, H, W)


if __name__ == "__main__":
    key = jax.random.PRNGKey(0)
    kx, kp = jax.random.split(key)

    B, C, H, W = 2, 32, 8, 8          # channels divisible by 4 heads
    x = jax.random.normal(kx, (B, C, H, W), jnp.float32)
    params = init_params(kp, C)

    out = self_attention_pallas(x, params)
    out = jax.block_until_ready(out)

    ref = self_attention_ref(x, params)
    assert out.shape == (B, C, H, W)
    # Tolerance loosened vs the pure-f32 version: matmuls use bf16 operands
    # (f32 accumulation) and the softmax denom uses an approximate reciprocal.
    assert jnp.allclose(out, ref, atol=5e-2, rtol=5e-2), "mismatch vs JAX reference"

    print("KERNEL_OK")
</pallas_src>

<mosaic_0001>
module attributes {stable_mosaic.version = 11 : i64} {
  func.func @self_attention_kernel(%arg0: i32, %arg1: memref<1x64x32xf32, #tpu.memory_space<vmem>>, %arg2: memref<1x32xf32, #tpu.memory_space<vmem>>, %arg3: memref<1x32xf32, #tpu.memory_space<vmem>>, %arg4: memref<32x96xbf16, #tpu.memory_space<vmem>>, %arg5: memref<1x96xf32, #tpu.memory_space<vmem>>, %arg6: memref<32x32xbf16, #tpu.memory_space<vmem>>, %arg7: memref<1x32xf32, #tpu.memory_space<vmem>>, %arg8: memref<1x32xf32, #tpu.memory_space<vmem>>, %arg9: memref<1x32xf32, #tpu.memory_space<vmem>>, %arg10: memref<32x32xbf16, #tpu.memory_space<vmem>>, %arg11: memref<1x32xf32, #tpu.memory_space<vmem>>, %arg12: memref<1x64x32xf32, #tpu.memory_space<vmem>>) attributes {dimension_semantics = [#tpu.dimension_semantics<parallel>], iteration_bounds = array<i64: 2>, scalar_prefetch = 0 : i64, scratch_operands = 0 : i64, tpu.core_type = #tpu.core_type<tc>, window_params = [{transform_indices = @transform_0, window_bounds = array<i64: 1, 64, 32>}, {pipeline_mode = #tpu.pipeline_mode<synchronous>, transform_indices = @transform_1, window_bounds = array<i64: 1, 32>}, {pipeline_mode = #tpu.pipeline_mode<synchronous>, transform_indices = @transform_2, window_bounds = array<i64: 1, 32>}, {pipeline_mode = #tpu.pipeline_mode<synchronous>, transform_indices = @transform_3, window_bounds = array<i64: 32, 96>}, {pipeline_mode = #tpu.pipeline_mode<synchronous>, transform_indices = @transform_4, window_bounds = array<i64: 1, 96>}, {pipeline_mode = #tpu.pipeline_mode<synchronous>, transform_indices = @transform_5, window_bounds = array<i64: 32, 32>}, {pipeline_mode = #tpu.pipeline_mode<synchronous>, transform_indices = @transform_6, window_bounds = array<i64: 1, 32>}, {pipeline_mode = #tpu.pipeline_mode<synchronous>, transform_indices = @transform_7, window_bounds = array<i64: 1, 32>}, {pipeline_mode = #tpu.pipeline_mode<synchronous>, transform_indices = @transform_8, window_bounds = array<i64: 1, 32>}, {pipeline_mode = #tpu.pipeline_mode<synchronous>, transform_indices = @transform_9, window_bounds = array<i64: 32, 32>}, {pipeline_mode = #tpu.pipeline_mode<synchronous>, transform_indices = @transform_10, window_bounds = array<i64: 1, 32>}, {transform_indices = @transform_11, window_bounds = array<i64: 1, 64, 32>}]} {
    %c0 = arith.constant 0 : index
    %c0_0 = arith.constant 0 : index
    %c0_1 = arith.constant 0 : index
    %0 = vector.load %arg1[%c0, %c0_0, %c0_1] : memref<1x64x32xf32, #tpu.memory_space<vmem>>, vector<1x64x32xf32>
    %1 = vector.shape_cast %0 : vector<1x64x32xf32> to vector<64x32xf32>
    %c0_2 = arith.constant 0 : index
    %c0_3 = arith.constant 0 : index
    %2 = vector.load %arg2[%c0_2, %c0_3] : memref<1x32xf32, #tpu.memory_space<vmem>>, vector<1x32xf32>
    %c0_4 = arith.constant 0 : index
    %c0_5 = arith.constant 0 : index
    %3 = vector.load %arg3[%c0_4, %c0_5] : memref<1x32xf32, #tpu.memory_space<vmem>>, vector<1x32xf32>
    %cst = arith.constant dense<0.000000e+00> : vector<64xf32>
    %4 = vector.multi_reduction <add>, %1, %cst [1] : vector<64x32xf32> to vector<64xf32>
    %5 = vector.shape_cast %4 : vector<64xf32> to vector<64x1xf32>
    %cst_6 = arith.constant 3.200000e+01 : f32
    %6 = vector.broadcast %cst_6 : f32 to vector<64x1xf32>
    %7 = arith.divf %5, %6 : vector<64x1xf32>
    %8 = vector.broadcast %7 : vector<64x1xf32> to vector<64x32xf32>
    %9 = arith.subf %1, %8 : vector<64x32xf32>
    %10 = arith.mulf %9, %9 : vector<64x32xf32>
    %cst_7 = arith.constant dense<0.000000e+00> : vector<64xf32>
    %11 = vector.multi_reduction <add>, %10, %cst_7 [1] : vector<64x32xf32> to vector<64xf32>
    %12 = vector.shape_cast %11 : vector<64xf32> to vector<64x1xf32>
    %cst_8 = arith.constant 3.200000e+01 : f32
    %13 = vector.broadcast %cst_8 : f32 to vector<64x1xf32>
    %14 = arith.divf %12, %13 : vector<64x1xf32>
    %cst_9 = arith.constant 9.99999974E-6 : f32
    %15 = vector.broadcast %cst_9 : f32 to vector<64x1xf32>
    %16 = arith.addf %14, %15 : vector<64x1xf32>
    %17 = math.rsqrt %16 : vector<64x1xf32>
    %18 = vector.broadcast %17 : vector<64x1xf32> to vector<64x32xf32>
    %19 = arith.mulf %9, %18 : vector<64x32xf32>
    %20 = vector.broadcast %2 : vector<1x32xf32> to vector<64x32xf32>
    %21 = arith.mulf %19, %20 : vector<64x32xf32>
    %22 = vector.broadcast %3 : vector<1x32xf32> to vector<64x32xf32>
    %23 = arith.addf %21, %22 : vector<64x32xf32>
    %24 = arith.truncf %23 : vector<64x32xf32> to vector<64x32xbf16>
    %c0_10 = arith.constant 0 : index
    %c0_11 = arith.constant 0 : index
    %25 = vector.load %arg4[%c0_10, %c0_11] : memref<32x96xbf16, #tpu.memory_space<vmem>>, vector<32x96xbf16>
    %cst_12 = arith.constant dense<0.000000e+00> : vector<64x96xf32>
    %26 = tpu.matmul %24, %25, %cst_12 {dimension_numbers = #tpu.dot_dimension_numbers<[1], [0], [0], [1], [0, 0, 1, 1], [], []>} : vector<64x32xbf16>, vector<32x96xbf16>, vector<64x96xf32> -> vector<64x96xf32>
    %c0_13 = arith.constant 0 : index
    %c0_14 = arith.constant 0 : index
    %27 = vector.load %arg5[%c0_13, %c0_14] : memref<1x96xf32, #tpu.memory_space<vmem>>, vector<1x96xf32>
    %28 = vector.broadcast %27 : vector<1x96xf32> to vector<64x96xf32>
    %29 = arith.addf %26, %28 : vector<64x96xf32>
    %30 = arith.truncf %29 : vector<64x96xf32> to vector<64x96xbf16>
    %c0_15 = arith.constant 0 : index
    %c0_16 = arith.constant 0 : index
    %31 = vector.load %arg6[%c0_15, %c0_16] : memref<32x32xbf16, #tpu.memory_space<vmem>>, vector<32x32xbf16>
    %cst_17 = arith.constant 0.000000e+00 : f32
    %32 = vector.broadcast %cst_17 : f32 to vector<64x32xf32>
    %33 = vector.extract_strided_slice %30 {offsets = [0, 0], sizes = [64, 8], strides = [1, 1]} : vector<64x96xbf16> to vector<64x8xbf16>
    %34 = vector.extract_strided_slice %30 {offsets = [0, 32], sizes = [64, 8], strides = [1, 1]} : vector<64x96xbf16> to vector<64x8xbf16>
    %35 = vector.extract_strided_slice %30 {offsets = [0, 64], sizes = [64, 8], strides = [1, 1]} : vector<64x96xbf16> to vector<64x8xbf16>
    %36 = tpu.transpose %34, [1, 0] : vector<64x8xbf16> -> vector<8x64xbf16>
    %cst_18 = arith.constant dense<0.000000e+00> : vector<64x64xf32>
    %37 = tpu.matmul %33, %36, %cst_18 {dimension_numbers = #tpu.dot_dimension_numbers<[1], [0], [0], [1], [0, 0, 1, 1], [], []>} : vector<64x8xbf16>, vector<8x64xbf16>, vector<64x64xf32> -> vector<64x64xf32>
    %cst_19 = arith.constant dense<0xFF800000> : vector<64xf32>
    %38 = vector.multi_reduction <maximumf>, %37, %cst_19 [1] : vector<64x64xf32> to vector<64xf32>
    %39 = vector.shape_cast %38 : vector<64xf32> to vector<64x1xf32>
    %40 = vector.broadcast %39 : vector<64x1xf32> to vector<64x64xf32>
    %41 = arith.subf %37, %40 : vector<64x64xf32>
    %42 = math.exp %41 : vector<64x64xf32>
    %cst_20 = arith.constant dense<0.000000e+00> : vector<64xf32>
    %43 = vector.multi_reduction <add>, %42, %cst_20 [1] : vector<64x64xf32> to vector<64xf32>
    %44 = vector.shape_cast %43 : vector<64xf32> to vector<64x1xf32>
    %45 = tpu.reciprocal %44 {approx = true} : vector<64x1xf32> -> vector<64x1xf32>
    %46 = vector.broadcast %45 : vector<64x1xf32> to vector<64x64xf32>
    %47 = arith.mulf %42, %46 : vector<64x64xf32>
    %48 = arith.truncf %47 : vector<64x64xf32> to vector<64x64xbf16>
    %cst_21 = arith.constant dense<0.000000e+00> : vector<64x8xf32>
    %49 = tpu.matmul %48, %35, %cst_21 {dimension_numbers = #tpu.dot_dimension_numbers<[1], [0], [0], [1], [0, 0, 1, 1], [], []>} : vector<64x64xbf16>, vector<64x8xbf16>, vector<64x8xf32> -> vector<64x8xf32>
    %50 = arith.truncf %49 : vector<64x8xf32> to vector<64x8xbf16>
    %51 = vector.extract_strided_slice %31 {offsets = [0, 0], sizes = [8, 32], strides = [1, 1]} : vector<32x32xbf16> to vector<8x32xbf16>
    %cst_22 = arith.constant dense<0.000000e+00> : vector<64x32xf32>
    %52 = tpu.matmul %50, %51, %cst_22 {dimension_numbers = #tpu.dot_dimension_numbers<[1], [0], [0], [1], [0, 0, 1, 1], [], []>} : vector<64x8xbf16>, vector<8x32xbf16>, vector<64x32xf32> -> vector<64x32xf32>
    %53 = arith.addf %32, %52 : vector<64x32xf32>
    %54 = vector.extract_strided_slice %30 {offsets = [0, 8], sizes = [64, 8], strides = [1, 1]} : vector<64x96xbf16> to vector<64x8xbf16>
    %55 = vector.extract_strided_slice %30 {offsets = [0, 40], sizes = [64, 8], strides = [1, 1]} : vector<64x96xbf16> to vector<64x8xbf16>
    %56 = vector.extract_strided_slice %30 {offsets = [0, 72], sizes = [64, 8], strides = [1, 1]} : vector<64x96xbf16> to vector<64x8xbf16>
    %57 = tpu.transpose %55, [1, 0] : vector<64x8xbf16> -> vector<8x64xbf16>
    %cst_23 = arith.constant dense<0.000000e+00> : vector<64x64xf32>
    %58 = tpu.matmul %54, %57, %cst_23 {dimension_numbers = #tpu.dot_dimension_numbers<[1], [0], [0], [1], [0, 0, 1, 1], [], []>} : vector<64x8xbf16>, vector<8x64xbf16>, vector<64x64xf32> -> vector<64x64xf32>
    %cst_24 = arith.constant dense<0xFF800000> : vector<64xf32>
    %59 = vector.multi_reduction <maximumf>, %58, %cst_24 [1] : vector<64x64xf32> to vector<64xf32>
    %60 = vector.shape_cast %59 : vector<64xf32> to vector<64x1xf32>
    %61 = vector.broadcast %60 : vector<64x1xf32> to vector<64x64xf32>
    %62 = arith.subf %58, %61 : vector<64x64xf32>
    %63 = math.exp %62 : vector<64x64xf32>
    %cst_25 = arith.constant dense<0.000000e+00> : vector<64xf32>
    %64 = vector.multi_reduction <add>, %63, %cst_25 [1] : vector<64x64xf32> to vector<64xf32>
    %65 = vector.shape_cast %64 : vector<64xf32> to vector<64x1xf32>
    %66 = tpu.reciprocal %65 {approx = true} : vector<64x1xf32> -> vector<64x1xf32>
    %67 = vector.broadcast %66 : vector<64x1xf32> to vector<64x64xf32>
    %68 = arith.mulf %63, %67 : vector<64x64xf32>
    %69 = arith.truncf %68 : vector<64x64xf32> to vector<64x64xbf16>
    %cst_26 = arith.constant dense<0.000000e+00> : vector<64x8xf32>
    %70 = tpu.matmul %69, %56, %cst_26 {dimension_numbers = #tpu.dot_dimension_numbers<[1], [0], [0], [1], [0, 0, 1, 1], [], []>} : vector<64x64xbf16>, vector<64x8xbf16>, vector<64x8xf32> -> vector<64x8xf32>
    %71 = arith.truncf %70 : vector<64x8xf32> to vector<64x8xbf16>
    %72 = vector.extract_strided_slice %31 {offsets = [8, 0], sizes = [8, 32], strides = [1, 1]} : vector<32x32xbf16> to vector<8x32xbf16>
    %cst_27 = arith.constant dense<0.000000e+00> : vector<64x32xf32>
    %73 = tpu.matmul %71, %72, %cst_27 {dimension_numbers = #tpu.dot_dimension_numbers<[1], [0], [0], [1], [0, 0, 1, 1], [], []>} : vector<64x8xbf16>, vector<8x32xbf16>, vector<64x32xf32> -> vector<64x32xf32>
    %74 = arith.addf %53, %73 : vector<64x32xf32>
    %75 = vector.extract_strided_slice %30 {offsets = [0, 16], sizes = [64, 8], strides = [1, 1]} : vector<64x96xbf16> to vector<64x8xbf16>
    %76 = vector.extract_strided_slice %30 {offsets = [0, 48], sizes = [64, 8], strides = [1, 1]} : vector<64x96xbf16> to vector<64x8xbf16>
    %77 = vector.extract_strided_slice %30 {offsets = [0, 80], sizes = [64, 8], strides = [1, 1]} : vector<64x96xbf16> to vector<64x8xbf16>
    %78 = tpu.transpose %76, [1, 0] : vector<64x8xbf16> -> vector<8x64xbf16>
    %cst_28 = arith.constant dense<0.000000e+00> : vector<64x64xf32>
    %79 = tpu.matmul %75, %78, %cst_28 {dimension_numbers = #tpu.dot_dimension_numbers<[1], [0], [0], [1], [0, 0, 1, 1], [], []>} : vector<64x8xbf16>, vector<8x64xbf16>, vector<64x64xf32> -> vector<64x64xf32>
    %cst_29 = arith.constant dense<0xFF800000> : vector<64xf32>
    %80 = vector.multi_reduction <maximumf>, %79, %cst_29 [1] : vector<64x64xf32> to vector<64xf32>
    %81 = vector.shape_cast %80 : vector<64xf32> to vector<64x1xf32>
    %82 = vector.broadcast %81 : vector<64x1xf32> to vector<64x64xf32>
    %83 = arith.subf %79, %82 : vector<64x64xf32>
    %84 = math.exp %83 : vector<64x64xf32>
    %cst_30 = arith.constant dense<0.000000e+00> : vector<64xf32>
    %85 = vector.multi_reduction <add>, %84, %cst_30 [1] : vector<64x64xf32> to vector<64xf32>
    %86 = vector.shape_cast %85 : vector<64xf32> to vector<64x1xf32>
    %87 = tpu.reciprocal %86 {approx = true} : vector<64x1xf32> -> vector<64x1xf32>
    %88 = vector.broadcast %87 : vector<64x1xf32> to vector<64x64xf32>
    %89 = arith.mulf %84, %88 : vector<64x64xf32>
    %90 = arith.truncf %89 : vector<64x64xf32> to vector<64x64xbf16>
    %cst_31 = arith.constant dense<0.000000e+00> : vector<64x8xf32>
    %91 = tpu.matmul %90, %77, %cst_31 {dimension_numbers = #tpu.dot_dimension_numbers<[1], [0], [0], [1], [0, 0, 1, 1], [], []>} : vector<64x64xbf16>, vector<64x8xbf16>, vector<64x8xf32> -> vector<64x8xf32>
    %92 = arith.truncf %91 : vector<64x8xf32> to vector<64x8xbf16>
    %93 = vector.extract_strided_slice %31 {offsets = [16, 0], sizes = [8, 32], strides = [1, 1]} : vector<32x32xbf16> to vector<8x32xbf16>
    %cst_32 = arith.constant dense<0.000000e+00> : vector<64x32xf32>
    %94 = tpu.matmul %92, %93, %cst_32 {dimension_numbers = #tpu.dot_dimension_numbers<[1], [0], [0], [1], [0, 0, 1, 1], [], []>} : vector<64x8xbf16>, vector<8x32xbf16>, vector<64x32xf32> -> vector<64x32xf32>
    %95 = arith.addf %74, %94 : vector<64x32xf32>
    %96 = vector.extract_strided_slice %30 {offsets = [0, 24], sizes = [64, 8], strides = [1, 1]} : vector<64x96xbf16> to vector<64x8xbf16>
    %97 = vector.extract_strided_slice %30 {offsets = [0, 56], sizes = [64, 8], strides = [1, 1]} : vector<64x96xbf16> to vector<64x8xbf16>
    %98 = vector.extract_strided_slice %30 {offsets = [0, 88], sizes = [64, 8], strides = [1, 1]} : vector<64x96xbf16> to vector<64x8xbf16>
    %99 = tpu.transpose %97, [1, 0] : vector<64x8xbf16> -> vector<8x64xbf16>
    %cst_33 = arith.constant dense<0.000000e+00> : vector<64x64xf32>
    %100 = tpu.matmul %96, %99, %cst_33 {dimension_numbers = #tpu.dot_dimension_numbers<[1], [0], [0], [1], [0, 0, 1, 1], [], []>} : vector<64x8xbf16>, vector<8x64xbf16>, vector<64x64xf32> -> vector<64x64xf32>
    %cst_34 = arith.constant dense<0xFF800000> : vector<64xf32>
    %101 = vector.multi_reduction <maximumf>, %100, %cst_34 [1] : vector<64x64xf32> to vector<64xf32>
    %102 = vector.shape_cast %101 : vector<64xf32> to vector<64x1xf32>
    %103 = vector.broadcast %102 : vector<64x1xf32> to vector<64x64xf32>
    %104 = arith.subf %100, %103 : vector<64x64xf32>
    %105 = math.exp %104 : vector<64x64xf32>
    %cst_35 = arith.constant dense<0.000000e+00> : vector<64xf32>
    %106 = vector.multi_reduction <add>, %105, %cst_35 [1] : vector<64x64xf32> to vector<64xf32>
    %107 = vector.shape_cast %106 : vector<64xf32> to vector<64x1xf32>
    %108 = tpu.reciprocal %107 {approx = true} : vector<64x1xf32> -> vector<64x1xf32>
    %109 = vector.broadcast %108 : vector<64x1xf32> to vector<64x64xf32>
    %110 = arith.mulf %105, %109 : vector<64x64xf32>
    %111 = arith.truncf %110 : vector<64x64xf32> to vector<64x64xbf16>
    %cst_36 = arith.constant dense<0.000000e+00> : vector<64x8xf32>
    %112 = tpu.matmul %111, %98, %cst_36 {dimension_numbers = #tpu.dot_dimension_numbers<[1], [0], [0], [1], [0, 0, 1, 1], [], []>} : vector<64x64xbf16>, vector<64x8xbf16>, vector<64x8xf32> -> vector<64x8xf32>
    %113 = arith.truncf %112 : vector<64x8xf32> to vector<64x8xbf16>
    %114 = vector.extract_strided_slice %31 {offsets = [24, 0], sizes = [8, 32], strides = [1, 1]} : vector<32x32xbf16> to vector<8x32xbf16>
    %cst_37 = arith.constant dense<0.000000e+00> : vector<64x32xf32>
    %115 = tpu.matmul %113, %114, %cst_37 {dimension_numbers = #tpu.dot_dimension_numbers<[1], [0], [0], [1], [0, 0, 1, 1], [], []>} : vector<64x8xbf16>, vector<8x32xbf16>, vector<64x32xf32> -> vector<64x32xf32>
    %116 = arith.addf %95, %115 : vector<64x32xf32>
    %c0_38 = arith.constant 0 : index
    %c0_39 = arith.constant 0 : index
    %117 = vector.load %arg7[%c0_38, %c0_39] : memref<1x32xf32, #tpu.memory_space<vmem>>, vector<1x32xf32>
    %118 = vector.broadcast %117 : vector<1x32xf32> to vector<64x32xf32>
    %119 = arith.addf %116, %118 : vector<64x32xf32>
    %120 = arith.addf %119, %1 : vector<64x32xf32>
    %c0_40 = arith.constant 0 : index
    %c0_41 = arith.constant 0 : index
    %121 = vector.load %arg8[%c0_40, %c0_41] : memref<1x32xf32, #tpu.memory_space<vmem>>, vector<1x32xf32>
    %c0_42 = arith.constant 0 : index
    %c0_43 = arith.constant 0 : index
    %122 = vector.load %arg9[%c0_42, %c0_43] : memref<1x32xf32, #tpu.memory_space<vmem>>, vector<1x32xf32>
    %cst_44 = arith.constant dense<0.000000e+00> : vector<64xf32>
    %123 = vector.multi_reduction <add>, %120, %cst_44 [1] : vector<64x32xf32> to vector<64xf32>
    %124 = vector.shape_cast %123 : vector<64xf32> to vector<64x1xf32>
    %cst_45 = arith.constant 3.200000e+01 : f32
    %125 = vector.broadcast %cst_45 : f32 to vector<64x1xf32>
    %126 = arith.divf %124, %125 : vector<64x1xf32>
    %127 = vector.broadcast %126 : vector<64x1xf32> to vector<64x32xf32>
    %128 = arith.subf %120, %127 : vector<64x32xf32>
    %129 = arith.mulf %128, %128 : vector<64x32xf32>
    %cst_46 = arith.constant dense<0.000000e+00> : vector<64xf32>
    %130 = vector.multi_reduction <add>, %129, %cst_46 [1] : vector<64x32xf32> to vector<64xf32>
    %131 = vector.shape_cast %130 : vector<64xf32> to vector<64x1xf32>
    %cst_47 = arith.constant 3.200000e+01 : f32
    %132 = vector.broadcast %cst_47 : f32 to vector<64x1xf32>
    %133 = arith.divf %131, %132 : vector<64x1xf32>
    %cst_48 = arith.constant 9.99999974E-6 : f32
    %134 = vector.broadcast %cst_48 : f32 to vector<64x1xf32>
    %135 = arith.addf %133, %134 : vector<64x1xf32>
    %136 = math.rsqrt %135 : vector<64x1xf32>
    %137 = vector.broadcast %136 : vector<64x1xf32> to vector<64x32xf32>
    %138 = arith.mulf %128, %137 : vector<64x32xf32>
    %139 = vector.broadcast %121 : vector<1x32xf32> to vector<64x32xf32>
    %140 = arith.mulf %138, %139 : vector<64x32xf32>
    %141 = vector.broadcast %122 : vector<1x32xf32> to vector<64x32xf32>
    %142 = arith.addf %140, %141 : vector<64x32xf32>
    %143 = arith.truncf %142 : vector<64x32xf32> to vector<64x32xbf16>
    %c0_49 = arith.constant 0 : index
    %c0_50 = arith.constant 0 : index
    %144 = vector.load %arg10[%c0_49, %c0_50] : memref<32x32xbf16, #tpu.memory_space<vmem>>, vector<32x32xbf16>
    %cst_51 = arith.constant dense<0.000000e+00> : vector<64x32xf32>
    %145 = tpu.matmul %143, %144, %cst_51 {dimension_numbers = #tpu.dot_dimension_numbers<[1], [0], [0], [1], [0, 0, 1, 1], [], []>} : vector<64x32xbf16>, vector<32x32xbf16>, vector<64x32xf32> -> vector<64x32xf32>
    %c0_52 = arith.constant 0 : index
    %c0_53 = arith.constant 0 : index
    %146 = vector.load %arg11[%c0_52, %c0_53] : memref<1x32xf32, #tpu.memory_space<vmem>>, vector<1x32xf32>
    %147 = vector.broadcast %146 : vector<1x32xf32> to vector<64x32xf32>
    %148 = arith.addf %145, %147 : vector<64x32xf32>
    %cst_54 = arith.constant 0.000000e+00 : f32
    %149 = vector.broadcast %cst_54 : f32 to vector<64x32xf32>
    %150 = arith.subf %149, %148 : vector<64x32xf32>
    %cst_55 = arith.constant 0.000000e+00 : f32
    %151 = vector.broadcast %cst_55 : f32 to vector<64x32xf32>
    %152 = arith.maximumf %151, %150 : vector<64x32xf32>
    %153 = vector.broadcast %cst_55 : f32 to vector<64x32xf32>
    %154 = arith.subf %153, %150 : vector<64x32xf32>
    %155 = arith.cmpf one, %154, %154 : vector<64x32xf32>
    %156 = vector.broadcast %cst_55 : f32 to vector<64x32xf32>
    %157 = arith.addf %156, %150 : vector<64x32xf32>
    %158 = math.absf %154 : vector<64x32xf32>
    %cst_56 = arith.constant 0.000000e+00 : f32
    %159 = vector.broadcast %cst_56 : f32 to vector<64x32xf32>
    %160 = arith.subf %159, %158 : vector<64x32xf32>
    %161 = math.exp %160 : vector<64x32xf32>
    %162 = math.log1p %161 : vector<64x32xf32>
    %163 = arith.addf %152, %162 : vector<64x32xf32>
    %164 = arith.select %155, %157, %163 : vector<64x32xi1>, vector<64x32xf32>
    %cst_57 = arith.constant 0.000000e+00 : f32
    %165 = vector.broadcast %cst_57 : f32 to vector<64x32xf32>
    %166 = arith.subf %165, %164 : vector<64x32xf32>
    %167 = arith.addf %166, %120 : vector<64x32xf32>
    %c0_58 = arith.constant 0 : index
    %c0_59 = arith.constant 0 : index
    %c0_60 = arith.constant 0 : index
    %168 = vector.load %arg12[%c0_58, %c0_59, %c0_60] : memref<1x64x32xf32, #tpu.memory_space<vmem>>, vector<1x64x32xf32>
    %169 = vector.shape_cast %168 : vector<1x64x32xf32> to vector<64x32xf32>
    %170 = vector.shape_cast %167 : vector<64x32xf32> to vector<1x64x32xf32>
    tpu.vector_store %arg12[%c0_58, %c0_59, %c0_60], %170 {strides = array<i32>} : memref<1x64x32xf32, #tpu.memory_space<vmem>>, vector<1x64x32xf32>,
    return
  }
  func.func @transform_0(%arg0: i32) -> (i32, i32, i32) {
    %c0_i32 = arith.constant 0 : i32
    %c0_i32_0 = arith.constant 0 : i32
    %c0_i32_1 = arith.constant 0 : i32
    return %arg0, %c0_i32, %c0_i32_0 : i32, i32, i32
  }
  func.func @transform_1(%arg0: i32) -> (i32, i32) {
    %c0_i32 = arith.constant 0 : i32
    %c0_i32_0 = arith.constant 0 : i32
    %c0_i32_1 = arith.constant 0 : i32
    return %c0_i32, %c0_i32_0 : i32, i32
  }
  func.func @transform_2(%arg0: i32) -> (i32, i32) {
    %c0_i32 = arith.constant 0 : i32
    %c0_i32_0 = arith.constant 0 : i32
    %c0_i32_1 = arith.constant 0 : i32
    return %c0_i32, %c0_i32_0 : i32, i32
  }
  func.func @transform_3(%arg0: i32) -> (i32, i32) {
    %c0_i32 = arith.constant 0 : i32
    %c0_i32_0 = arith.constant 0 : i32
    %c0_i32_1 = arith.constant 0 : i32
    return %c0_i32, %c0_i32_0 : i32, i32
  }
  func.func @transform_4(%arg0: i32) -> (i32, i32) {
    %c0_i32 = arith.constant 0 : i32
    %c0_i32_0 = arith.constant 0 : i32
    %c0_i32_1 = arith.constant 0 : i32
    return %c0_i32, %c0_i32_0 : i32, i32
  }
  func.func @transform_5(%arg0: i32) -> (i32, i32) {
    %c0_i32 = arith.constant 0 : i32
    %c0_i32_0 = arith.constant 0 : i32
    %c0_i32_1 = arith.constant 0 : i32
    return %c0_i32, %c0_i32_0 : i32, i32
  }
  func.func @transform_6(%arg0: i32) -> (i32, i32) {
    %c0_i32 = arith.constant 0 : i32
    %c0_i32_0 = arith.constant 0 : i32
    %c0_i32_1 = arith.constant 0 : i32
    return %c0_i32, %c0_i32_0 : i32, i32
  }
  func.func @transform_7(%arg0: i32) -> (i32, i32) {
    %c0_i32 = arith.constant 0 : i32
    %c0_i32_0 = arith.constant 0 : i32
    %c0_i32_1 = arith.constant 0 : i32
    return %c0_i32, %c0_i32_0 : i32, i32
  }
  func.func @transform_8(%arg0: i32) -> (i32, i32) {
    %c0_i32 = arith.constant 0 : i32
    %c0_i32_0 = arith.constant 0 : i32
    %c0_i32_1 = arith.constant 0 : i32
    return %c0_i32, %c0_i32_0 : i32, i32
  }
  func.func @transform_9(%arg0: i32) -> (i32, i32) {
    %c0_i32 = arith.constant 0 : i32
    %c0_i32_0 = arith.constant 0 : i32
    %c0_i32_1 = arith.constant 0 : i32
    return %c0_i32, %c0_i32_0 : i32, i32
  }
  func.func @transform_10(%arg0: i32) -> (i32, i32) {
    %c0_i32 = arith.constant 0 : i32
    %c0_i32_0 = arith.constant 0 : i32
    %c0_i32_1 = arith.constant 0 : i32
    return %c0_i32, %c0_i32_0 : i32, i32
  }
  func.func @transform_11(%arg0: i32) -> (i32, i32, i32) {
    %c0_i32 = arith.constant 0 : i32
    %c0_i32_0 = arith.constant 0 : i32
    %c0_i32_1 = arith.constant 0 : i32
    return %arg0, %c0_i32, %c0_i32_0 : i32, i32, i32
  }
}

</mosaic_0001>

<bundles_post_ra>
// kernel: tpu_custom_call.1
= control target key start
LH: loop header
LB: loop body
LE: loop exit
PB: predicated region body
PF: predicated region fallthrough
CT: control target
= control target key end

     0   :  { %s3329_s17 = smov 0   ;;  %s4128_s0 = inlined_call_operand.vmem [shape: f32[2,64,32], index: 0, kind: input, shape index: {}]   ;;  %s4129_s1 = inlined_call_operand.vmem [shape: f32[1,32], index: 1, kind: input, shape index: {}]   ;;  %s4130_s2 = inlined_call_operand.vmem [shape: f32[1,32], index: 2, kind: input, shape index: {}]   ;;  %s4131_s3 = inlined_call_operand.vmem [shape: bf16[32,96], index: 3, kind: input, shape index: {}]   ;;  %s4132_s4 = inlined_call_operand.vmem [shape: f32[1,96], index: 4, kind: input, shape index: {}]   ;;  %s4133_s5 = inlined_call_operand.vmem [shape: bf16[32,32], index: 5, kind: input, shape index: {}]   ;;  %s4134_s6 = inlined_call_operand.vmem [shape: f32[1,32], index: 6, kind: input, shape index: {}]   ;;  %s4135_s7 = inlined_call_operand.vmem [shape: f32[1,32], index: 7, kind: input, shape index: {}]   ;;  %s4136_s8 = inlined_call_operand.vmem [shape: f32[1,32], index: 8, kind: input, shape index: {}]   ;;  %s4137_s9 = inlined_call_operand.vmem [shape: bf16[32,32], index: 9, kind: input, shape index: {}]   ;;  %s4138_s10 = inlined_call_operand.vmem [shape: f32[1,32], index: 10, kind: input, shape index: {}]   ;;  %s4139_s11 = inlined_call_operand.vmem [shape: f32[2,64,32], index: 11, kind: output, shape index: {}]  }
   0x1 LB: > { %s2639_s18 = sadd.s32 4294967295, %s3256_s17   ;;  %p2643_p0 = scmp.ge.s32.totalorder %s3256_s17, 1  ;;  %s3256_s17 = sphi %s3329_s17, %s21_s17  }
   0x2   : > { %p337_p1 = scmp.lt.s32.totalorder %s3256_s17, 3 }
   0x4   : > { %p338_p2 = pnand %p2643_p0, %p337_p1 }
   0x5   : > { %p377_p3 = scmp.lt.s32.totalorder (!%p338_p2), %s2639_s18, 1  ;;  %s3258_s14 = smov (!%p338_p2), 96  }
   0x6   : > { %341 = sbr.rel (%p338_p2) target bundleno = 3829 (0xef5), region = 64  ;;  %s3259_s15 = smov (!%p338_p2), 64  }
   0x7   : > { %s3260_s16 = smov (!%p338_p2), 88   ;;  %s3261_s20 = smov (!%p338_p2), 120  }
   0x8   : > { %s3262_s24 = smov (!%p338_p2), 56   ;;  %s3263_s25 = smov (!%p338_p2), 80  }
   0x9   : > { %s3264_s26 = smov (!%p338_p2), 112   ;;  %s3265_s27 = smov (!%p338_p2), 72  }
   0xa   : > { %s3266_s28 = smov (!%p338_p2), 104   ;;  %s3267_s12 = smov (!%p338_p2), 48  }
   0xb   : > { %s4149_s18 = smov (!%p377_p3, %s2639_s18), 1  ;;  %vm398_vm0 = vcmask 261120   ;;  %v3046_v56 = vld [vmem:[%s4131_s3 + $0x8] sm:$0xff]   ;;  %v3047_v57 = vld [vmem:[%s4131_s3] sm:$0xff]   ;;  %vm656_vm1 = vcmask 64512   ;;  %vm746_vm2 = vcmask 523264  }
   0xc   : > { %s2717_s19 = sshll.u32 %s4149_s18, 6  ;;  %2815 = vmatprep.subr.bf16.mxu0 %v3046_v56  ;;  %vm1234_vm3 = vcmask 1043456  }
   0xd   : > { %s3345_s22 = scalar_lea.vmem %s4128_s0, %s2717_s19  ;;  %2816 = vmatpush3.bf16.msra.mxu0 %v3046_v56 }
   0xe   : > { %v388_v0 = vld [vmem:[%s3345_s22] sm:$0xff]  ;;  %v390_v1 = vld [vmem:[%s3345_s22 + $0x10] sm:$0xff]  ;;  %v389_v2 = vld [vmem:[%s3345_s22 + $0x8] sm:$0xff]  ;;  %2817 = vmatprep.subr.bf16.mxu0 %v3047_v57 }
   0xf   : > { %v399_v3 = vsel %vm398_vm0, %v388_v0, 0.0  ;;  %v405_v4 = vsel %vm398_vm0, %v390_v1, 0.0  ;;  %v391_v5 = vld [vmem:[%s3345_s22 + $0x18] sm:$0xff]  ;;  %v402_v6 = vsel %vm398_vm0, %v389_v2, 0.0  ;;  %v392_v8 = vld [vmem:[%s3345_s22 + $0x20] sm:$0xff]  ;;  %v393_v9 = vld [vmem:[%s3345_s22 + $0x28] sm:$0xff] }
  0x10   : > { %400 = vadd.xlane.f32.xlu0 %v399_v3  ;;  %406 = vadd.xlane.f32.xlu1 %v405_v4  ;;  %v408_v7 = vsel %vm398_vm0, %v391_v5, 0.0  ;;  %v411_v10 = vsel %vm398_vm0, %v392_v8, 0.0  ;;  %v414_v11 = vsel %vm398_vm0, %v393_v9, 0.0  ;;  %v394_v12 = vld [vmem:[%s3345_s22 + $0x30] sm:$0xff]  ;;  %v395_v13 = vld [vmem:[%s3345_s22 + $0x38] sm:$0xff] }
  0x11   : > { %v417_v14 = vsel %vm398_vm0, %v394_v12, 0.0  ;;  %v420_v15 = vsel %vm398_vm0, %v395_v13, 0.0  ;;  %2818 = vmatpush3.bf16.msra.mxu0 %v3047_v57 }
  0x14   : > { %403 = vadd.xlane.f32.xlu0 %v402_v6  ;;  %409 = vadd.xlane.f32.xlu1 %v408_v7 }
  0x18   : > { %412 = vadd.xlane.f32.xlu0 %v411_v10  ;;  %415 = vadd.xlane.f32.xlu1 %v414_v11 }
  0x1c   : > { %418 = vadd.xlane.f32.xlu0 %v417_v14  ;;  %421 = vadd.xlane.f32.xlu1 %v420_v15 }
  0x99   : > { %v401_v16 = vpop.xlane.xlu0 %400  ;;  %v407_v17 = vpop.xlane.xlu1 %406 }
  0x9a   : > { %v424_v18 = vmul.f32 0.03125, %v401_v16  ;;  %v426_v19 = vmul.f32 0.03125, %v407_v17 }
  0x9c   : > { %v3363_v20 = vsub.f32 %v388_v0, %v424_v18  ;;  %v3365_v21 = vsub.f32 %v390_v1, %v426_v19 }
  0x9d   : > { %v404_v22 = vpop.xlane.xlu0 %403  ;;  %v410_v23 = vpop.xlane.xlu1 %409 }
  0x9e   : > { %v425_v24 = vmul.f32 0.03125, %v404_v22  ;;  %v427_v25 = vmul.f32 0.03125, %v410_v23  ;;  %v440_v26 = vmul.f32 %v3363_v20, %v3363_v20  ;;  %v442_v27 = vmul.f32 %v3365_v21, %v3365_v21  ;;  %v2648_v22 = vld [vmem:[%s4129_s1] ss:$0 sm:$0xff] }
  0xa0   : > { %v3371_v28 = vsub.f32 %v389_v2, %v425_v24  ;;  %v3373_v29 = vsub.f32 %v391_v5, %v427_v25  ;;  %v448_v30 = vsel %vm398_vm0, %v440_v26, 0.0  ;;  %v454_v33 = vsel %vm398_vm0, %v442_v27, 0.0  ;;  %v2649_v27 = vld [vmem:[%s4130_s2] ss:$0 sm:$0xff] }
  0xa1   : > { %449 = vadd.xlane.f32.xlu0 %v448_v30  ;;  %v413_v31 = vpop.xlane.xlu0 %412  ;;  %v416_v32 = vpop.xlane.xlu1 %415 }
  0xa2   : > { %v428_v34 = vmul.f32 0.03125, %v413_v31  ;;  %v429_v35 = vmul.f32 0.03125, %v416_v32  ;;  %v441_v36 = vmul.f32 %v3371_v28, %v3371_v28  ;;  %v443_v37 = vmul.f32 %v3373_v29, %v3373_v29 }
  0xa4   : > { %v3381_v38 = vsub.f32 %v392_v8, %v428_v34  ;;  %v3383_v39 = vsub.f32 %v393_v9, %v429_v35  ;;  %v451_v40 = vsel %vm398_vm0, %v441_v36, 0.0  ;;  %v457_v43 = vsel %vm398_vm0, %v443_v37, 0.0 }
  0xa5   : > { %455 = vadd.xlane.f32.xlu0 %v454_v33  ;;  %452 = vadd.xlane.f32.xlu1 %v451_v40  ;;  %v419_v41 = vpop.xlane.xlu0 %418  ;;  %v422_v42 = vpop.xlane.xlu1 %421 }
  0xa6   : > { %v430_v44 = vmul.f32 0.03125, %v419_v41  ;;  %v431_v45 = vmul.f32 0.03125, %v422_v42  ;;  %v444_v46 = vmul.f32 %v3381_v38, %v3381_v38  ;;  %v445_v47 = vmul.f32 %v3383_v39, %v3383_v39 }
  0xa8   : > { %v3391_v48 = vsub.f32 %v394_v12, %v430_v44  ;;  %v3393_v49 = vsub.f32 %v395_v13, %v431_v45  ;;  %v460_v50 = vsel %vm398_vm0, %v444_v46, 0.0  ;;  %v463_v51 = vsel %vm398_vm0, %v445_v47, 0.0 }
  0xa9   : > { %458 = vadd.xlane.f32.xlu1 %v457_v43  ;;  %461 = vadd.xlane.f32.xlu0 %v460_v50 }
  0xaa   : > { %v446_v52 = vmul.f32 %v3391_v48, %v3391_v48  ;;  %v447_v53 = vmul.f32 %v3393_v49, %v3393_v49 }
  0xac   : > { %v466_v54 = vsel %vm398_vm0, %v446_v52, 0.0  ;;  %v469_v55 = vsel %vm398_vm0, %v447_v53, 0.0 }
  0xad   : > { %464 = vadd.xlane.f32.xlu1 %v463_v51  ;;  %467 = vadd.xlane.f32.xlu0 %v466_v54 }
  0xb1   : > { %470 = vadd.xlane.f32.xlu1 %v469_v55 }
 0x12a   : > { %v450_v58 = vpop.xlane.xlu0 %449 }
 0x12b   : > { %v472_v59 = vmul.f32 0.03125, %v450_v58 }
 0x12d   : > { %v480_v60 = vadd.f32 1e-05, %v472_v59 }
 0x12e   : > { %v453_v61 = vpop.xlane.xlu1 %452  ;;  %v456_v62 = vpop.xlane.xlu0 %455 }
 0x12f   : > { %3050 = vrsqrt.f32 %v480_v60  ;;  %v473_v63 = vmul.f32 0.03125, %v453_v61  ;;  %v474_v0 = vmul.f32 0.03125, %v456_v62  ;;  %v2650_v60 = vld [vmem:[%s4132_s4] ss:$0 sm:$0xff] }
 0x131   : > { %v481_v1 = vadd.f32 1e-05, %v473_v63  ;;  %v482_v2 = vadd.f32 1e-05, %v474_v0 }
 0x132   : > { %v459_v3 = vpop.xlane.xlu1 %458  ;;  %v462_v4 = vpop.xlane.xlu0 %461 }
 0x133   : > { %3052 = vrsqrt.f32 %v481_v1  ;;  %v475_v5 = vmul.f32 0.03125, %v459_v3  ;;  %v476_v6 = vmul.f32 0.03125, %v462_v4 }
 0x134   : > { %3054 = vrsqrt.f32 %v482_v2 }
 0x135   : > { %v483_v7 = vadd.f32 1e-05, %v475_v5  ;;  %v484_v8 = vadd.f32 1e-05, %v476_v6 }
 0x136   : > { %v465_v9 = vpop.xlane.xlu1 %464  ;;  %v468_v10 = vpop.xlane.xlu0 %467 }
 0x137   : > { %3056 = vrsqrt.f32 %v483_v7  ;;  %v477_v11 = vmul.f32 0.03125, %v465_v9  ;;  %v478_v12 = vmul.f32 0.03125, %v468_v10 }
 0x138   : > { %3058 = vrsqrt.f32 %v484_v8 }
 0x139   : > { %v485_v13 = vadd.f32 1e-05, %v477_v11  ;;  %v486_v14 = vadd.f32 1e-05, %v478_v12 }
 0x13a   : > { %v471_v15 = vpop.xlane.xlu1 %470 }
 0x13b   : > { %3060 = vrsqrt.f32 %v485_v13  ;;  %v479_v16 = vmul.f32 0.03125, %v471_v15 }
 0x13c   : > { %v3051_v17 = vpop.eup %3050  ;;  %3062 = vrsqrt.f32 %v486_v14 }
 0x13d   : > { %v487_v18 = vadd.f32 1e-05, %v479_v16  ;;  %v496_v19 = vmul.f32 %v3051_v17, %v3363_v20 }
 0x13f   : > { %3064 = vrsqrt.f32 %v487_v18  ;;  %v510_v26 = vmul.f32 %v2648_v22, %v496_v19 }
 0x140   : > { %v3053_v23 = vpop.eup %3052 }
 0x141   : > { %v3055_v24 = vpop.eup %3054  ;;  %v497_v25 = vmul.f32 %v3053_v23, %v3371_v28  ;;  %v524_v20 = vadd.f32 %v2649_v27, %v510_v26 }
 0x142   : > { %v498_v30 = vmul.f32 %v3055_v24, %v3365_v21 }
 0x143   : > { %v511_v31 = vmul.f32 %v2648_v22, %v497_v25 }
 0x144   : > { %v3057_v32 = vpop.eup %3056  ;;  %v512_v36 = vmul.f32 %v2648_v22, %v498_v30 }
 0x145   : > { %v3059_v33 = vpop.eup %3058  ;;  %v525_v34 = vadd.f32 %v2649_v27, %v511_v31  ;;  %v499_v35 = vmul.f32 %v3057_v32, %v3373_v29 }
 0x146   : > { %v500_v37 = vmul.f32 %v3059_v33, %v3381_v38  ;;  %v526_v43 = vadd.f32 %v2649_v27, %v512_v36 }
 0x147   : > { %v532_v40 = vpack.c.bf16 %v525_v34, %v524_v20  ;;  %v513_v41 = vmul.f32 %v2648_v22, %v499_v35 }
 0x148   : > { %v3061_v28 = vpop.eup %3060  ;;  %v514_v45 = vmul.f32 %v2648_v22, %v500_v37 }
 0x149   : > { %v3063_v42 = vpop.eup %3062  ;;  %2819 = vmatprep.mubr.msk.bf16.mxu0 %vm398_vm0, %v532_v40  ;;  %v527_v44 = vadd.f32 %v2649_v27, %v513_v41  ;;  %v501_v21 = vmul.f32 %v3061_v28, %v3383_v39 }
 0x14a   : > { %v502_v46 = vmul.f32 %v3063_v42, %v3391_v48  ;;  %v528_v29 = vadd.f32 %v2649_v27, %v514_v45 }
 0x14b   : > { %v533_v47 = vpack.c.bf16 %v527_v44, %v526_v43  ;;  %v515_v50 = vmul.f32 %v2648_v22, %v501_v21 }
 0x14c   : > { %v3065_v51 = vpop.eup %3064  ;;  %v516_v53 = vmul.f32 %v2648_v22, %v502_v46 }
 0x14d   : > { %2820 = vmatmul.mubr.msk.bf16.vlgmr.msra.gmra.mxu0 %vm398_vm0, %v533_v47  ;;  %v529_v38 = vadd.f32 %v2649_v27, %v515_v50  ;;  %v503_v52 = vmul.f32 %v3065_v51, %v3393_v49 }
 0x14e   : > { %v530_v56 = vadd.f32 %v2649_v27, %v516_v53 }
 0x14f   : > { %v534_v54 = vpack.c.bf16 %v529_v38, %v528_v29  ;;  %v517_v55 = vmul.f32 %v2648_v22, %v503_v52 }
 0x151   : > { %2823 = vmatprep.mubr.msk.bf16.mxu0 %vm398_vm0, %v534_v54  ;;  %v531_v57 = vadd.f32 %v2649_v27, %v517_v55 }
 0x153   : > { %v535_v39 = vpack.c.bf16 %v531_v57, %v530_v56 }
 0x155   : > { %2824 = vmatmul.mubr.msk.bf16.gmra.mxu0 %vm398_vm0, %v535_v39 }
 0x20d   : > { %v2821_v48 = vpop.f32.mrf.mxu0 }
 0x20e   : > { %v614_v11 = vadd.f32 %v2821_v48, %v2650_v60 }
 0x20f   : > { %v605_v58 = vpop.f32.mrf.mxu0 }
 0x210   : > { %v606_v62 = vadd.f32 %v2650_v60, %v605_v58 }
 0x211   : > { %v2822_v59 = vpop.f32.mrf.mxu0 }
 0x212   : > { %v617_v9 = vadd.f32 %v2822_v59, %v2650_v60 }
 0x213   : > { %v608_v61 = vpop.f32.mrf.mxu0 }
 0x214   : > { %v609_v49 = vadd.f32 %v2650_v60, %v608_v61  ;;  %v3440_v12 = vpack.c.bf16 %v617_v9, %v614_v11 }
 0x215   : > { %v2825_v63 = vpop.f32.mrf.mxu0 }
 0x216   : > { %v3430_v0 = vpack.c.bf16 %v609_v49, %v606_v62  ;;  %v630_v3 = vadd.f32 %v2825_v63, %v2650_v60 }
 0x217   : > { %v621_v1 = vpop.f32.mrf.mxu0 }
 0x218   : > { %2835 = vmatprep.mubr.msk.bf16.mxu1 %vm656_vm1, %v3430_v0  ;;  %v622_v6 = vadd.f32 %v2650_v60, %v621_v1 }
 0x219   : > { %v2826_v2 = vpop.f32.mrf.mxu0 }
 0x21a   : > { %v633_v4 = vadd.f32 %v2826_v2, %v2650_v60 }
 0x21b   : > { %v624_v5 = vpop.f32.mrf.mxu0 }
 0x21c   : > { %v3434_v7 = vpack.c.bf16 %v633_v4, %v630_v3  ;;  %v625_v8 = vadd.f32 %v2650_v60, %v624_v5 }
 0x21e   : > { %v3436_v10 = vpack.c.bf16 %v625_v8, %v622_v6  ;;  %654 = vrot.lane.b32.xlu0 %v3434_v7, %s3258_s14 }
 0x220   : > { %652 = vrot.lane.b32.xlu1 %v3436_v10, %s3258_s14 }
 0x224   : > { %650 = vrot.lane.b32.xlu1 %v3440_v12, %s3258_s14 }
 0x228   : > { %648 = vrot.lane.b32.xlu1 %v3430_v0, %s3258_s14 }
 0x290   : > { %v655_v13 = vpop.permute.xlu0 %654 }
 0x291   : > { %3007 = vmatprep.subr.msk.bf16.mxu1 %vm656_vm1, %v655_v13  ;;  %v679_v14 = vsel %vm656_vm1, %v655_v13, 0 }
 0x292   : > { %2828 = vmatpush3.bf16.xpose.msra.mxu1 %v679_v14  ;;  %v653_v15 = vpop.permute.xlu1 %652 }
 0x293   : > { %3008 = vmatprep.subr.msk.bf16.mxu1 %vm656_vm1, %v653_v15  ;;  %v676_v16 = vsel %vm656_vm1, %v653_v15, 0 }
 0x296   : > { %v651_v17 = vpop.permute.xlu1 %650 }
 0x297   : > { %v673_v18 = vsel %vm656_vm1, %v651_v17, 0 }
 0x29a   : > { %2830 = vmatpush3.bf16.xpose.msra.mxu1 %v676_v16  ;;  %v649_v19 = vpop.permute.xlu1 %648 }
 0x29b   : > { %3009 = vmatprep.subr.msk.bf16.mxu1 %vm656_vm1, %v651_v17  ;;  %v670_v22 = vsel %vm656_vm1, %v649_v19, 0 }
 0x2a2   : > { %2832 = vmatpush3.bf16.xpose.msra.mxu1 %v673_v18 }
 0x2a3   : > { %3010 = vmatprep.subr.msk.bf16.mxu1 %vm656_vm1, %v649_v19 }
 0x2aa   : > { %2834 = vmatpush3.bf16.xpose.msra.mxu1 %v670_v22 }
 0x2b1   : > { %2836 = vmatmul.mubr.msk.bf16.vlgmr.msra.gmra.mxu1 %vm656_vm1, %v3440_v12 }
 0x2b2   : > { %2839 = vmatprep.mubr.msk.bf16.mxu1 %vm656_vm1, %v3436_v10 }
 0x2b9   : > { %2840 = vmatmul.mubr.msk.bf16.gmra.mxu1 %vm656_vm1, %v3434_v7 }
 0x371   : > { %v2837_v23 = vpop.f32.mrf.mxu1 }
 0x372   : > { %v753_v30 = vsel %vm746_vm2, %v2837_v23, -inf }
 0x373   : > { %v715_v24 = vpop.f32.mrf.mxu1 }
 0x374   : > { %v747_v25 = vsel %vm746_vm2, %v715_v24, -inf }
 0x375   : > { %748 = vmax.xlane.f32.xlu0 %v747_v25  ;;  %v2838_v26 = vpop.f32.mrf.mxu1 }
 0x376   : > { %v756_v20 = vsel %vm746_vm2, %v2838_v26, -inf }
 0x377   : > { %v718_v27 = vpop.f32.mrf.mxu1 }
 0x378   : > { %v750_v31 = vsel %vm746_vm2, %v718_v27, -inf }
 0x379   : > { %754 = vmax.xlane.f32.xlu0 %v753_v30  ;;  %751 = vmax.xlane.f32.xlu1 %v750_v31  ;;  %v2841_v32 = vpop.f32.mrf.mxu1 }
 0x37a   : > { %v765_v37 = vsel %vm746_vm2, %v2841_v32, -inf }
 0x37b   : > { %v731_v33 = vpop.f32.mrf.mxu1 }
 0x37c   : > { %v759_v41 = vsel %vm746_vm2, %v731_v33, -inf }
 0x37d   : > { %757 = vmax.xlane.f32.xlu0 %v756_v20  ;;  %v2842_v34 = vpop.f32.mrf.mxu1 }
 0x37e   : > { %v768_v35 = vsel %vm746_vm2, %v2842_v34, -inf }
 0x37f   : > { %769 = vmax.xlane.f32.xlu1 %v768_v35  ;;  %v734_v36 = vpop.f32.mrf.mxu1 }
 0x380   : > { %v762_v40 = vsel %vm746_vm2, %v734_v36, -inf }
 0x381   : > { %766 = vmax.xlane.f32.xlu0 %v765_v37 }
 0x383   : > { %763 = vmax.xlane.f32.xlu1 %v762_v40 }
 0x385   : > { %760 = vmax.xlane.f32.xlu0 %v759_v41 }
 0x394   : > { %843 = vrot.lane.b32.xlu1 %v3436_v10, %s3259_s15 }
 0x398   : > { %841 = vrot.lane.b32.xlu1 %v3440_v12, %s3259_s15 }
 0x39b   : > { %845 = vrot.lane.b32.xlu0 %v3434_v7, %s3259_s15 }
 0x39c   : > { %839 = vrot.lane.b32.xlu1 %v3430_v0, %s3259_s15  ;;  %s3268_s15 = smov 40  }
 0x3fe   : > { %v749_v28 = vpop.xlane.xlu0 %748 }
 0x3ff   : > { %v771_v42 = vsub.f32 %v715_v24, %v749_v28 }
 0x401   : > { %v779_v45 = vmul.f32 1.442695, %v771_v42 }
 0x402   : > { %v755_v43 = vpop.xlane.xlu0 %754  ;;  %v752_v44 = vpop.xlane.xlu1 %751 }
 0x403   : > { %v773_v21 = vsub.f32 %v2837_v23, %v755_v43  ;;  %v772_v47 = vsub.f32 %v718_v27, %v752_v44 }
 0x405   : > { %v783_v46 = vmul.f32 1.442695, %v773_v21  ;;  %v781_v38 = vmul.f32 1.442695, %v772_v47 }
 0x406   : > { %v758_v50 = vpop.xlane.xlu0 %757 }
 0x407   : > { %3066 = vpow2.f32 %v783_v46  ;;  %v774_v51 = vsub.f32 %v2838_v26, %v758_v50 }
 0x408   : > { %v770_v29 = vpop.xlane.xlu1 %769  ;;  %3068 = vpow2.f32 %v779_v45 }
 0x409   : > { %v785_v52 = vmul.f32 1.442695, %v774_v51  ;;  %v778_v53 = vsub.f32 %v2842_v34, %v770_v29 }
 0x40a   : > { %v767_v54 = vpop.xlane.xlu0 %766 }
 0x40b   : > { %3070 = vpow2.f32 %v785_v52  ;;  %v777_v55 = vsub.f32 %v2841_v32, %v767_v54  ;;  %v793_v57 = vmul.f32 1.442695, %v778_v53 }
 0x40c   : > { %v764_v56 = vpop.xlane.xlu1 %763  ;;  %3072 = vpow2.f32 %v781_v38 }
 0x40d   : > { %v791_v39 = vmul.f32 1.442695, %v777_v55  ;;  %v776_v48 = vsub.f32 %v734_v36, %v764_v56 }
 0x40e   : > { %v761_v58 = vpop.xlane.xlu0 %760 }
 0x40f   : > { %3074 = vpow2.f32 %v791_v39  ;;  %v775_v59 = vsub.f32 %v731_v33, %v761_v58  ;;  %v789_v61 = vmul.f32 1.442695, %v776_v48 }
 0x410   : > { %v844_v60 = vpop.permute.xlu1 %843  ;;  %3076 = vpow2.f32 %v793_v57 }
 0x411   : > { %v787_v62 = vmul.f32 1.442695, %v775_v59 }
 0x412   : > { %v846_v49 = vpop.permute.xlu0 %845 }
 0x413   : > { %3078 = vpow2.f32 %v787_v62  ;;  %2843 = vmatprep.subr.bf16.mxu0 %v846_v49  ;;  %v640_v62 = vld [vmem:[%s4133_s5] sm:$0xf] }
 0x414   : > { %v3470_v63 = vpop.eup %3066  ;;  %2844 = vmatpush3.bf16.msra.mxu0 %v846_v49  ;;  %3080 = vpow2.f32 %v789_v61  ;;  %v842_v3 = vpop.permute.xlu1 %841  ;;  %v1316_v49 = vsel %vm1234_vm3, %v640_v62, 0 }
 0x415   : > { %2845 = vmatprep.subr.bf16.mxu0 %v844_v60  ;;  %v801_v1 = vsel %vm746_vm2, %v3470_v63, 0.0  ;;  %v3069_v2 = vpop.eup %3068 }
 0x416   : > { %802 = vadd.xlane.f32.xlu0 %v801_v1  ;;  %v795_v5 = vsel %vm746_vm2, %v3069_v2, 0.0 }
 0x418   : > { %v3071_v4 = vpop.eup %3070  ;;  %2846 = vmatpush3.bf16.msra.mxu0 %v844_v60  ;;  %v840_v11 = vpop.permute.xlu1 %839 }
 0x419   : > { %2847 = vmatprep.subr.bf16.mxu0 %v842_v3  ;;  %v804_v6 = vsel %vm746_vm2, %v3071_v4, 0.0  ;;  %v3073_v8 = vpop.eup %3072 }
 0x41a   : > { %796 = vadd.xlane.f32.xlu0 %v795_v5  ;;  %805 = vadd.xlane.f32.xlu1 %v804_v6  ;;  %v798_v14 = vsel %vm746_vm2, %v3073_v8, 0.0 }
 0x41c   : > { %v3476_v9 = vpop.eup %3074  ;;  %2848 = vmatpush3.bf16.msra.mxu0 %v842_v3 }
 0x41d   : > { %2849 = vmatprep.subr.bf16.mxu0 %v840_v11  ;;  %v813_v13 = vsel %vm746_vm2, %v3476_v9, 0.0  ;;  %v3077_v15 = vpop.eup %3076 }
 0x41e   : > { %814 = vadd.xlane.f32.xlu0 %v813_v13  ;;  %799 = vadd.xlane.f32.xlu1 %v798_v14  ;;  %v816_v17 = vsel %vm746_vm2, %v3077_v15, 0.0 }
 0x420   : > { %v3079_v16 = vpop.eup %3078  ;;  %2850 = vmatpush3.bf16.msra.mxu0 %v840_v11 }
 0x421   : > { %v807_v18 = vsel %vm746_vm2, %v3079_v16, 0.0  ;;  %v3081_v19 = vpop.eup %3080 }
 0x422   : > { %817 = vadd.xlane.f32.xlu0 %v816_v17  ;;  %808 = vadd.xlane.f32.xlu1 %v807_v18  ;;  %v810_v22 = vsel %vm746_vm2, %v3081_v19, 0.0 }
 0x426   : > { %811 = vadd.xlane.f32.xlu0 %v810_v22 }
 0x433   : > { %944 = vrot.lane.b32.xlu1 %v3436_v10, %s3260_s16 }
 0x437   : > { %942 = vrot.lane.b32.xlu1 %v3440_v12, %s3260_s16 }
 0x43b   : > { %940 = vrot.lane.b32.xlu1 %v3430_v0, %s3260_s16 }
 0x43c   : > { %946 = vrot.lane.b32.xlu0 %v3434_v7, %s3260_s16  ;;  %s4054_s16 = scalar_lea.vmem %s4139_s11, %s2717_s19 }
 0x43f   : > { %934 = vrot.lane.b32.xlu1 %v3440_v12, %s3261_s20 }
 0x440   : > { %932 = vrot.lane.b32.xlu0 %v3430_v0, %s3261_s20 }
 0x443   : > { %938 = vrot.lane.b32.xlu1 %v3434_v7, %s3261_s20 }
 0x444   : > { %936 = vrot.lane.b32.xlu0 %v3436_v10, %s3261_s20 }
 0x49f   : > { %v803_v23 = vpop.xlane.xlu0 %802 }
 0x4a3   : > { %v797_v24 = vpop.xlane.xlu0 %796  ;;  %v806_v25 = vpop.xlane.xlu1 %805 }
 0x4a4   : > { %3082 = vrcp.f32 %v806_v25 }
 0x4a5   : > { %3084 = vrcp.f32 %v797_v24 }
 0x4a6   : > { %3086 = vrcp.f32 %v803_v23 }
 0x4a7   : > { %v815_v26 = vpop.xlane.xlu0 %814  ;;  %v800_v27 = vpop.xlane.xlu1 %799 }
 0x4a8   : > { %3088 = vrcp.f32 %v800_v27 }
 0x4ab   : > { %v818_v30 = vpop.xlane.xlu0 %817  ;;  %v809_v31 = vpop.xlane.xlu1 %808 }
 0x4ac   : > { %3090 = vrcp.f32 %v818_v30 }
 0x4ad   : > { %3092 = vrcp.f32 %v809_v31 }
 0x4ae   : > { %3094 = vrcp.f32 %v815_v26 }
 0x4af   : > { %v812_v32 = vpop.xlane.xlu0 %811  ;;  %v945_v50 = vpop.permute.xlu1 %944 }
 0x4b0   : > { %3096 = vrcp.f32 %v812_v32  ;;  %v967_v56 = vsel %vm656_vm1, %v945_v50, 0 }
 0x4b1   : > { %v3083_v33 = vpop.eup %3082 }
 0x4b2   : > { %v3085_v34 = vpop.eup %3084  ;;  %v830_v37 = vmul.f32 %v3083_v33, %v3071_v4 }
 0x4b3   : > { %v947_v20 = vpop.permute.xlu0 %946  ;;  %v3087_v35 = vpop.eup %3086  ;;  %v827_v40 = vmul.f32 %v3085_v34, %v3069_v2 }
 0x4b4   : > { %3011 = vmatprep.subr.msk.bf16.mxu0 %vm656_vm1, %v947_v20  ;;  %v829_v28 = vmul.f32 %v3087_v35, %v3470_v63  ;;  %v970_v46 = vsel %vm656_vm1, %v947_v20, 0  ;;  %v943_v57 = vpop.permute.xlu1 %942 }
 0x4b5   : > { %v3089_v36 = vpop.eup %3088  ;;  %v964_v39 = vsel %vm656_vm1, %v943_v57, 0 }
 0x4b6   : > { %v828_v41 = vmul.f32 %v3089_v36, %v3073_v8  ;;  %v836_v44 = vpack.c.bf16 %v830_v37, %v829_v28 }
 0x4b7   : > { %v933_v55 = vpop.permute.xlu0 %932 }
 0x4b8   : > { %v835_v42 = vpack.c.bf16 %v828_v41, %v827_v40  ;;  %v941_v48 = vpop.permute.xlu1 %940 }
 0x4b9   : > { %v3091_v43 = vpop.eup %3090  ;;  %v961_v58 = vsel %vm656_vm1, %v941_v48, 0 }
 0x4ba   : > { %v3093_v21 = vpop.eup %3092  ;;  %2851 = vmatprep.mubr.msk.bf16.mxu0 %vm746_vm2, %v835_v42  ;;  %v834_v38 = vmul.f32 %v3091_v43, %v3077_v15 }
 0x4bb   : > { %v3095_v45 = vpop.eup %3094  ;;  %2852 = vmatmul.mubr.msk.bf16.vlgmr.msra.gmra.mxu0 %vm746_vm2, %v836_v44  ;;  %v831_v51 = vmul.f32 %v3093_v21, %v3079_v16  ;;  %v937_v60 = vpop.permute.xlu0 %936 }
 0x4bc   : > { %2860 = vmatpush3.bf16.xpose.msra.mxu0 %v970_v46  ;;  %v833_v53 = vmul.f32 %v3095_v45, %v3476_v9  ;;  %v935_v59 = vpop.permute.xlu1 %934 }
 0x4bd   : > { %v3097_v47 = vpop.eup %3096  ;;  %3012 = vmatprep.subr.msk.bf16.mxu0 %vm656_vm1, %v945_v50 }
 0x4be   : > { %v832_v29 = vmul.f32 %v3097_v47, %v3081_v19  ;;  %v838_v54 = vpack.c.bf16 %v834_v38, %v833_v53 }
 0x4c0   : > { %v837_v52 = vpack.c.bf16 %v832_v29, %v831_v51  ;;  %v939_v61 = vpop.permute.xlu1 %938 }
 0x4c2   : > { %2855 = vmatprep.mubr.msk.bf16.mxu0 %vm746_vm2, %v837_v52 }
 0x4c3   : > { %2856 = vmatmul.mubr.msk.bf16.gmra.mxu0 %vm746_vm2, %v838_v54 }
 0x4c4   : > { %2862 = vmatpush3.bf16.xpose.msra.mxu0 %v967_v56  ;;  %2867 = vmatprep.mubr.msk.bf16.mxu0 %vm656_vm1, %v933_v55 }
 0x4c5   : > { %3013 = vmatprep.subr.msk.bf16.mxu0 %vm656_vm1, %v943_v57 }
 0x4cc   : > { %2864 = vmatpush3.bf16.xpose.msra.mxu0 %v964_v39 }
 0x4cd   : > { %3014 = vmatprep.subr.msk.bf16.mxu0 %vm656_vm1, %v941_v48 }
 0x4d4   : > { %2866 = vmatpush3.bf16.xpose.msra.mxu0 %v961_v58 }
 0x4d5   : > { %3016 = vmatprep.subr.msk.bf16.mxu0 %vm1234_vm3, %v640_v62 }
 0x4db   : > { %2868 = vmatmul.mubr.msk.bf16.vlgmr.msra.gmra.mxu0 %vm656_vm1, %v935_v59 }
 0x4dc   : > { %2871 = vmatprep.mubr.msk.bf16.mxu0 %vm656_vm1, %v937_v60  ;;  %2902 = vmatpush3.bf16.msra.mxu0 %v1316_v49 }
 0x4e3   : > { %2872 = vmatmul.mubr.msk.bf16.gmra.mxu0 %vm656_vm1, %v939_v61 }
 0x57b   : > { %v2853_v63 = vpop.f32.mrf.mxu0 }
 0x57d   : > { %v897_v1 = vpop.f32.mrf.mxu0 }
 0x57f   : > { %v2854_v2 = vpop.f32.mrf.mxu0 }
 0x580   : > { %v929_v5 = vpack.c.bf16 %v2854_v2, %v2853_v63 }
 0x581   : > { %v900_v3 = vpop.f32.mrf.mxu0 }
 0x582   : > { %v928_v4 = vpack.c.bf16 %v900_v3, %v897_v1 }
 0x583   : > { %v2857_v6 = vpop.f32.mrf.mxu0 }
 0x584   : > { %2903 = vmatprep.mubr.msk.bf16.mxu0 %vm656_vm1, %v928_v4 }
 0x585   : > { %v913_v8 = vpop.f32.mrf.mxu0  ;;  %2904 = vmatmul.mubr.msk.bf16.vlgmr.msra.gmra.mxu0 %vm656_vm1, %v929_v5 }
 0x587   : > { %v2858_v9 = vpop.f32.mrf.mxu0 }
 0x588   : > { %v931_v14 = vpack.c.bf16 %v2858_v9, %v2857_v6 }
 0x589   : > { %v916_v11 = vpop.f32.mrf.mxu0 }
 0x58a   : > { %v930_v13 = vpack.c.bf16 %v916_v11, %v913_v8 }
 0x58c   : > { %2907 = vmatprep.mubr.msk.bf16.mxu0 %vm656_vm1, %v930_v13 }
 0x58d   : > { %2908 = vmatmul.mubr.msk.bf16.gmra.mxu0 %vm656_vm1, %v931_v14 }
 0x59b   : > { %v2869_v15 = vpop.f32.mrf.mxu0 }
 0x59c   : > { %v1043_v22 = vsel %vm746_vm2, %v2869_v15, -inf }
 0x59d   : > { %v1006_v16 = vpop.f32.mrf.mxu0 }
 0x59e   : > { %v1037_v17 = vsel %vm746_vm2, %v1006_v16, -inf }
 0x59f   : > { %1038 = vmax.xlane.f32.xlu0 %v1037_v17  ;;  %v2870_v18 = vpop.f32.mrf.mxu0 }
 0x5a0   : > { %v1046_v26 = vsel %vm746_vm2, %v2870_v18, -inf }
 0x5a1   : > { %v1009_v19 = vpop.f32.mrf.mxu0 }
 0x5a2   : > { %v1040_v23 = vsel %vm746_vm2, %v1009_v19, -inf }
 0x5a3   : > { %1044 = vmax.xlane.f32.xlu0 %v1043_v22  ;;  %1041 = vmax.xlane.f32.xlu1 %v1040_v23  ;;  %v2873_v24 = vpop.f32.mrf.mxu0 }
 0x5a4   : > { %v1055_v32 = vsel %vm746_vm2, %v2873_v24, -inf }
 0x5a5   : > { %v1022_v25 = vpop.f32.mrf.mxu0 }
 0x5a6   : > { %v1049_v20 = vsel %vm746_vm2, %v1022_v25, -inf }
 0x5a7   : > { %1047 = vmax.xlane.f32.xlu0 %v1046_v26  ;;  %v2874_v27 = vpop.f32.mrf.mxu0 }
 0x5a8   : > { %v1058_v30 = vsel %vm746_vm2, %v2874_v27, -inf }
 0x5a9   : > { %1059 = vmax.xlane.f32.xlu1 %v1058_v30  ;;  %v1025_v31 = vpop.f32.mrf.mxu0 }
 0x5aa   : > { %v1052_v33 = vsel %vm746_vm2, %v1025_v31, -inf }
 0x5ab   : > { %1056 = vmax.xlane.f32.xlu0 %v1055_v32 }
 0x5ad   : > { %1053 = vmax.xlane.f32.xlu1 %v1052_v33 }
 0x5af   : > { %1050 = vmax.xlane.f32.xlu0 %v1049_v20 }
 0x5be   : > { %1133 = vrot.lane.b32.xlu1 %v3436_v10, %s3262_s24 }
 0x5c5   : > { %1135 = vrot.lane.b32.xlu0 %v3434_v7, %s3262_s24 }
 0x628   : > { %v1039_v34 = vpop.xlane.xlu0 %1038 }
 0x629   : > { %v1061_v35 = vsub.f32 %v1006_v16, %v1039_v34  ;;  %v641_v34 = vld [vmem:[%s4133_s5 + $0x4] sm:$0xf] }
 0x62b   : > { %v1069_v41 = vmul.f32 1.442695, %v1061_v35 }
 0x62c   : > { %v1045_v36 = vpop.xlane.xlu0 %1044  ;;  %v1042_v37 = vpop.xlane.xlu1 %1041 }
 0x62d   : > { %v1063_v40 = vsub.f32 %v2869_v15, %v1045_v36  ;;  %v1062_v42 = vsub.f32 %v1009_v19, %v1042_v37 }
 0x62f   : > { %v1073_v28 = vmul.f32 1.442695, %v1063_v40  ;;  %v1071_v45 = vmul.f32 1.442695, %v1062_v42 }
 0x630   : > { %v1048_v43 = vpop.xlane.xlu0 %1047 }
 0x631   : > { %3098 = vpow2.f32 %v1073_v28  ;;  %v1064_v44 = vsub.f32 %v2870_v18, %v1048_v43 }
 0x632   : > { %v1060_v21 = vpop.xlane.xlu1 %1059  ;;  %3100 = vpow2.f32 %v1069_v41  ;;  %v1236_v41 = vsel %vm1234_vm3, %v641_v34, 0 }
 0x633   : > { %v1075_v46 = vmul.f32 1.442695, %v1064_v44  ;;  %v1068_v54 = vsub.f32 %v2874_v27, %v1060_v21 }
 0x634   : > { %v1057_v47 = vpop.xlane.xlu0 %1056 }
 0x635   : > { %3102 = vpow2.f32 %v1075_v46  ;;  %v1067_v51 = vsub.f32 %v2873_v24, %v1057_v47  ;;  %v1083_v58 = vmul.f32 1.442695, %v1068_v54 }
 0x636   : > { %v1054_v50 = vpop.xlane.xlu1 %1053  ;;  %3104 = vpow2.f32 %v1071_v45 }
 0x637   : > { %v1066_v29 = vsub.f32 %v1025_v31, %v1054_v50  ;;  %v1081_v55 = vmul.f32 1.442695, %v1067_v51 }
 0x638   : > { %v1051_v38 = vpop.xlane.xlu0 %1050 }
 0x639   : > { %v1079_v52 = vmul.f32 1.442695, %v1066_v29  ;;  %v1065_v53 = vsub.f32 %v1022_v25, %v1051_v38 }
 0x63a   : > { %v1134_v48 = vpop.permute.xlu1 %1133 }
 0x63b   : > { %3106 = vpow2.f32 %v1079_v52  ;;  %v1077_v56 = vmul.f32 1.442695, %v1065_v53 }
 0x63c   : > { %v1136_v57 = vpop.permute.xlu0 %1135 }
 0x63d   : > { %3108 = vpow2.f32 %v1077_v56  ;;  %2875 = vmatprep.subr.bf16.mxu1 %v1136_v57 }
 0x63e   : > { %v3531_v39 = vpop.eup %3098  ;;  %2876 = vmatpush3.bf16.msra.mxu1 %v1136_v57  ;;  %3110 = vpow2.f32 %v1081_v55 }
 0x63f   : > { %2877 = vmatprep.subr.bf16.mxu1 %v1134_v48  ;;  %v1091_v59 = vsel %vm746_vm2, %v3531_v39, 0.0  ;;  %v3535_v60 = vpop.eup %3100  ;;  %3112 = vpow2.f32 %v1083_v58 }
 0x640   : > { %1092 = vadd.xlane.f32.xlu0 %v1091_v59  ;;  %v1085_v62 = vsel %vm746_vm2, %v3535_v60, 0.0 }
 0x642   : > { %v3537_v61 = vpop.eup %3102  ;;  %2878 = vmatpush3.bf16.msra.mxu1 %v1134_v48 }
 0x643   : > { %v1094_v49 = vsel %vm746_vm2, %v3537_v61, 0.0  ;;  %v3543_v63 = vpop.eup %3104 }
 0x644   : > { %1086 = vadd.xlane.f32.xlu0 %v1085_v62  ;;  %1095 = vadd.xlane.f32.xlu1 %v1094_v49  ;;  %v1088_v1 = vsel %vm746_vm2, %v3543_v63, 0.0 }
 0x648   : > { %v3547_v2 = vpop.eup %3106  ;;  %1089 = vadd.xlane.f32.xlu1 %v1088_v1 }
 0x649   : > { %v1100_v3 = vsel %vm746_vm2, %v3547_v2, 0.0 }
 0x64a   : > { %v3551_v4 = vpop.eup %3108  ;;  %1101 = vadd.xlane.f32.xlu0 %v1100_v3 }
 0x64b   : > { %v1097_v5 = vsel %vm746_vm2, %v3551_v4, 0.0  ;;  %v3555_v6 = vpop.eup %3110 }
 0x64c   : > { %1098 = vadd.xlane.f32.xlu1 %v1097_v5  ;;  %v1103_v8 = vsel %vm746_vm2, %v3555_v6, 0.0  ;;  %v3559_v9 = vpop.eup %3112 }
 0x64d   : > { %v1106_v11 = vsel %vm746_vm2, %v3559_v9, 0.0 }
 0x650   : > { %1104 = vadd.xlane.f32.xlu1 %v1103_v8 }
 0x654   : > { %1107 = vadd.xlane.f32.xlu1 %v1106_v11 }
 0x660   : > { %1131 = vrot.lane.b32.xlu0 %v3440_v12, %s3262_s24 }
 0x664   : > { %1397 = vrot.lane.b32.xlu0 %v3434_v7, %s3263_s25 }
 0x665   : > { %1129 = vrot.lane.b32.xlu1 %v3430_v0, %s3262_s24 }
 0x668   : > { %1393 = vrot.lane.b32.xlu0 %v3440_v12, %s3263_s25 }
 0x669   : > { %1395 = vrot.lane.b32.xlu1 %v3436_v10, %s3263_s25 }
 0x66c   : > { %1383 = vrot.lane.b32.xlu0 %v3430_v0, %s3264_s26 }
 0x66d   : > { %1391 = vrot.lane.b32.xlu1 %v3430_v0, %s3263_s25 }
 0x670   : > { %1387 = vrot.lane.b32.xlu0 %v3436_v10, %s3264_s26 }
 0x671   : > { %1385 = vrot.lane.b32.xlu1 %v3440_v12, %s3264_s26 }
 0x674   : > { %1775 = vrot.lane.b32.xlu0 %v3434_v7, %s3265_s27 }
 0x675   : > { %1389 = vrot.lane.b32.xlu1 %v3434_v7, %s3264_s26 }
 0x678   : > { %1771 = vrot.lane.b32.xlu0 %v3440_v12, %s3265_s27 }
 0x679   : > { %1773 = vrot.lane.b32.xlu1 %v3436_v10, %s3265_s27 }
 0x67c   : > { %1761 = vrot.lane.b32.xlu0 %v3430_v0, %s3266_s28 }
 0x67d   : > { %1769 = vrot.lane.b32.xlu1 %v3430_v0, %s3265_s27 }
 0x680   : > { %1765 = vrot.lane.b32.xlu0 %v3436_v10, %s3266_s28 }
 0x681   : > { %1763 = vrot.lane.b32.xlu1 %v3440_v12, %s3266_s28 }
 0x685   : > { %1767 = vrot.lane.b32.xlu1 %v3434_v7, %s3266_s28 }
 0x6c9   : > { %v1093_v13 = vpop.xlane.xlu0 %1092 }
 0x6cd   : > { %v1087_v14 = vpop.xlane.xlu0 %1086  ;;  %v1096_v15 = vpop.xlane.xlu1 %1095 }
 0x6ce   : > { %3114 = vrcp.f32 %v1087_v14 }
 0x6cf   : > { %3116 = vrcp.f32 %v1096_v15 }
 0x6d0   : > { %3118 = vrcp.f32 %v1093_v13 }
 0x6d1   : > { %v1090_v16 = vpop.xlane.xlu1 %1089 }
 0x6d2   : > { %3120 = vrcp.f32 %v1090_v16 }
 0x6d3   : > { %v1102_v17 = vpop.xlane.xlu0 %1101 }
 0x6d4   : > { %3122 = vrcp.f32 %v1102_v17 }
 0x6d5   : > { %v1099_v18 = vpop.xlane.xlu1 %1098 }
 0x6d6   : > { %3124 = vrcp.f32 %v1099_v18 }
 0x6d7   : > { %v1132_v19 = vpop.permute.xlu0 %1131 }
 0x6d8   : > { %2879 = vmatprep.subr.bf16.mxu1 %v1132_v19 }
 0x6d9   : > { %2880 = vmatpush3.bf16.msra.mxu1 %v1132_v19  ;;  %v1105_v22 = vpop.xlane.xlu1 %1104 }
 0x6da   : > { %3126 = vrcp.f32 %v1105_v22 }
 0x6db   : > { %v3115_v23 = vpop.eup %3114  ;;  %v1398_v44 = vpop.permute.xlu0 %1397 }
 0x6dc   : > { %v3117_v24 = vpop.eup %3116  ;;  %v1117_v31 = vmul.f32 %v3115_v23, %v3535_v60  ;;  %v1421_v55 = vsel %vm656_vm1, %v1398_v44, 0 }
 0x6dd   : > { %v1108_v25 = vpop.xlane.xlu1 %1107  ;;  %v3119_v26 = vpop.eup %3118  ;;  %v1120_v30 = vmul.f32 %v3117_v24, %v3537_v61 }
 0x6de   : > { %3128 = vrcp.f32 %v1108_v25  ;;  %v1119_v35 = vmul.f32 %v3119_v26, %v3531_v39 }
 0x6df   : > { %v3121_v27 = vpop.eup %3120  ;;  %v1394_v48 = vpop.permute.xlu0 %1393 }
 0x6e0   : > { %v1118_v32 = vmul.f32 %v3121_v27, %v3543_v63  ;;  %v1126_v40 = vpack.c.bf16 %v1120_v30, %v1119_v35  ;;  %v1415_v1 = vsel %vm656_vm1, %v1394_v48, 0 }
 0x6e1   : > { %v3123_v33 = vpop.eup %3122  ;;  %v1130_v20 = vpop.permute.xlu1 %1129 }
 0x6e2   : > { %2881 = vmatprep.subr.bf16.mxu1 %v1130_v20  ;;  %v1125_v36 = vpack.c.bf16 %v1118_v32, %v1117_v31  ;;  %v1122_v42 = vmul.f32 %v3123_v33, %v3547_v2 }
 0x6e3   : > { %v3125_v37 = vpop.eup %3124  ;;  %2882 = vmatpush3.bf16.msra.mxu1 %v1130_v20  ;;  %v1384_v49 = vpop.permute.xlu0 %1383 }
 0x6e4   : > { %2883 = vmatprep.mubr.msk.bf16.mxu1 %vm746_vm2, %v1125_v36  ;;  %3015 = vmatprep.subr.msk.bf16.mxu1 %vm1234_vm3, %v641_v34  ;;  %v1121_v28 = vmul.f32 %v3125_v37, %v3551_v4 }
 0x6e5   : > { %v1396_v57 = vpop.permute.xlu1 %1395 }
 0x6e6   : > { %2884 = vmatmul.mubr.msk.bf16.vlgmr.msra.gmra.mxu1 %vm746_vm2, %v1126_v40  ;;  %v1127_v43 = vpack.c.bf16 %v1122_v42, %v1121_v28  ;;  %v1418_v61 = vsel %vm656_vm1, %v1396_v57, 0 }
 0x6e7   : > { %2892 = vmatpush3.bf16.msra.mxu1 %v1236_v41  ;;  %v3127_v21 = vpop.eup %3126  ;;  %v1388_v2 = vpop.permute.xlu0 %1387 }
 0x6e8   : > { %2887 = vmatprep.mubr.msk.bf16.mxu1 %vm746_vm2, %v1127_v43  ;;  %3017 = vmatprep.subr.msk.bf16.mxu1 %vm656_vm1, %v1398_v44  ;;  %v1123_v46 = vmul.f32 %v3127_v21, %v3555_v6 }
 0x6e9   : > { %v1392_v63 = vpop.permute.xlu1 %1391 }
 0x6ea   : > { %v1412_v4 = vsel %vm656_vm1, %v1392_v63, 0 }
 0x6eb   : > { %v3129_v45 = vpop.eup %3128  ;;  %v1776_v5 = vpop.permute.xlu0 %1775 }
 0x6ec   : > { %v1124_v47 = vmul.f32 %v3129_v45, %v3559_v9  ;;  %v1799_v8 = vsel %vm656_vm1, %v1776_v5, 0 }
 0x6ed   : > { %v1386_v3 = vpop.permute.xlu1 %1385 }
 0x6ee   : > { %v1128_v50 = vpack.c.bf16 %v1124_v47, %v1123_v46 }
 0x6ef   : > { %v1772_v11 = vpop.permute.xlu0 %1771 }
 0x6f0   : > { %2888 = vmatmul.mubr.msk.bf16.gmra.mxu1 %vm746_vm2, %v1128_v50  ;;  %v1793_v15 = vsel %vm656_vm1, %v1772_v11, 0 }
 0x6f1   : > { %v1390_v6 = vpop.permute.xlu1 %1389 }
 0x6f3   : > { %v1762_v13 = vpop.permute.xlu0 %1761 }
 0x6f5   : > { %v1774_v9 = vpop.permute.xlu1 %1773 }
 0x6f6   : > { %v1796_v14 = vsel %vm656_vm1, %v1774_v9, 0 }
 0x6f7   : > { %v1766_v19 = vpop.permute.xlu0 %1765 }
 0x6f9   : > { %v1770_v16 = vpop.permute.xlu1 %1769 }
 0x6fa   : > { %v1790_v17 = vsel %vm656_vm1, %v1770_v16, 0 }
 0x6fd   : > { %v1764_v18 = vpop.permute.xlu1 %1763 }
 0x701   : > { %v1768_v22 = vpop.permute.xlu1 %1767 }
 0x7a6   : > { %v2885_v51 = vpop.f32.mrf.mxu1 }
 0x7a8   : > { %v1187_v29 = vpop.f32.mrf.mxu1 }
 0x7aa   : > { %v2886_v38 = vpop.f32.mrf.mxu1 }
 0x7ab   : > { %v1219_v54 = vpack.c.bf16 %v2886_v38, %v2885_v51 }
 0x7ac   : > { %v1190_v52 = vpop.f32.mrf.mxu1 }
 0x7ad   : > { %v1218_v53 = vpack.c.bf16 %v1190_v52, %v1187_v29 }
 0x7af   : > { %2893 = vmatprep.mubr.msk.bf16.mxu1 %vm656_vm1, %v1218_v53 }
 0x7b0   : > { %v2889_v56 = vpop.f32.mrf.mxu1  ;;  %2894 = vmatmul.mubr.msk.bf16.vlgmr.msra.gmra.mxu1 %vm656_vm1, %v1219_v54 }
 0x7b1   : > { %2912 = vmatpush3.bf16.xpose.msra.mxu1 %v1421_v55 }
 0x7b2   : > { %3018 = vmatprep.subr.msk.bf16.mxu1 %vm656_vm1, %v1396_v57  ;;  %v1203_v39 = vpop.f32.mrf.mxu1 }
 0x7b4   : > { %v2890_v58 = vpop.f32.mrf.mxu1 }
 0x7b5   : > { %v1221_v62 = vpack.c.bf16 %v2890_v58, %v2889_v56 }
 0x7b6   : > { %v1206_v59 = vpop.f32.mrf.mxu1 }
 0x7b7   : > { %v1220_v60 = vpack.c.bf16 %v1206_v59, %v1203_v39 }
 0x7b9   : > { %2914 = vmatpush3.bf16.xpose.msra.mxu1 %v1418_v61  ;;  %2897 = vmatprep.mubr.msk.bf16.mxu1 %vm656_vm1, %v1220_v60 }
 0x7ba   : > { %3019 = vmatprep.subr.msk.bf16.mxu1 %vm656_vm1, %v1394_v48  ;;  %2898 = vmatmul.mubr.msk.bf16.gmra.mxu1 %vm656_vm1, %v1221_v62 }
 0x7bb   : > { %2919 = vmatprep.mubr.msk.bf16.mxu1 %vm656_vm1, %v1384_v49 }
 0x7c1   : > { %2916 = vmatpush3.bf16.xpose.msra.mxu1 %v1415_v1 }
 0x7c2   : > { %3020 = vmatprep.subr.msk.bf16.mxu1 %vm656_vm1, %v1392_v63 }
 0x7c9   : > { %2918 = vmatpush3.bf16.xpose.msra.mxu1 %v1412_v4 }
 0x7ca   : > { %3022 = vmatprep.subr.msk.bf16.mxu1 %vm656_vm1, %v1776_v5 }
 0x7d0   : > { %2920 = vmatmul.mubr.msk.bf16.vlgmr.msra.gmra.mxu1 %vm656_vm1, %v1386_v3 }
 0x7d1   : > { %2923 = vmatprep.mubr.msk.bf16.mxu1 %vm656_vm1, %v1388_v2  ;;  %2954 = vmatpush3.bf16.xpose.msra.mxu1 %v1799_v8 }
 0x7d2   : > { %3023 = vmatprep.subr.msk.bf16.mxu1 %vm656_vm1, %v1774_v9 }
 0x7d8   : > { %2924 = vmatmul.mubr.msk.bf16.gmra.mxu1 %vm656_vm1, %v1390_v6 }
 0x7d9   : > { %2956 = vmatpush3.bf16.xpose.msra.mxu1 %v1796_v14  ;;  %2961 = vmatprep.mubr.msk.bf16.mxu1 %vm656_vm1, %v1762_v13 }
 0x7da   : > { %3024 = vmatprep.subr.msk.bf16.mxu1 %vm656_vm1, %v1772_v11 }
 0x7e1   : > { %2958 = vmatpush3.bf16.xpose.msra.mxu1 %v1793_v15 }
 0x7e2   : > { %3025 = vmatprep.subr.msk.bf16.mxu1 %vm656_vm1, %v1770_v16 }
 0x7e9   : > { %2960 = vmatpush3.bf16.xpose.msra.mxu1 %v1790_v17 }
 0x7f0   : > { %2962 = vmatmul.mubr.msk.bf16.vlgmr.msra.gmra.mxu1 %vm656_vm1, %v1764_v18 }
 0x7f1   : > { %2965 = vmatprep.mubr.msk.bf16.mxu1 %vm656_vm1, %v1766_v19 }
 0x7f8   : > { %2966 = vmatmul.mubr.msk.bf16.gmra.mxu1 %vm656_vm1, %v1768_v22 }
 0x870   : > { %v3628_v23 = vpop.f32.mrf.mxu1 }
 0x872   : > { %v3630_v24 = vpop.f32.mrf.mxu1 }
 0x874   : > { %v3632_v25 = vpop.f32.mrf.mxu1 }
 0x876   : > { %v3634_v26 = vpop.f32.mrf.mxu1 }
 0x87a   : > { %v3636_v27 = vpop.f32.mrf.mxu1 }
 0x87c   : > { %v3638_v30 = vpop.f32.mrf.mxu1 }
 0x87e   : > { %v3640_v31 = vpop.f32.mrf.mxu1 }
 0x880   : > { %v3642_v32 = vpop.f32.mrf.mxu1 }
 0x890   : > { %v2921_v33 = vpop.f32.mrf.mxu1 }
 0x891   : > { %v1494_v37 = vsel %vm746_vm2, %v2921_v33, -inf }
 0x892   : > { %v1457_v20 = vpop.f32.mrf.mxu1 }
 0x893   : > { %v1488_v34 = vsel %vm746_vm2, %v1457_v20, -inf }
 0x894   : > { %1489 = vmax.xlane.f32.xlu0 %v1488_v34  ;;  %v2922_v35 = vpop.f32.mrf.mxu1 }
 0x895   : > { %v1497_v42 = vsel %vm746_vm2, %v2922_v35, -inf }
 0x896   : > { %v1460_v36 = vpop.f32.mrf.mxu1 }
 0x897   : > { %v1491_v40 = vsel %vm746_vm2, %v1460_v36, -inf }
 0x898   : > { %1495 = vmax.xlane.f32.xlu0 %v1494_v37  ;;  %1492 = vmax.xlane.f32.xlu1 %v1491_v40  ;;  %v2925_v41 = vpop.f32.mrf.mxu1 }
 0x899   : > { %v1506_v46 = vsel %vm746_vm2, %v2925_v41, -inf }
 0x89a   : > { %v1473_v28 = vpop.f32.mrf.mxu1 }
 0x89b   : > { %v1500_v21 = vsel %vm746_vm2, %v1473_v28, -inf }
 0x89c   : > { %1498 = vmax.xlane.f32.xlu0 %v1497_v42  ;;  %v2926_v43 = vpop.f32.mrf.mxu1 }
 0x89d   : > { %v1509_v47 = vsel %vm746_vm2, %v2926_v43, -inf }
 0x89e   : > { %v1476_v44 = vpop.f32.mrf.mxu1 }
 0x89f   : > { %v1503_v45 = vsel %vm746_vm2, %v1476_v44, -inf }
 0x8a0   : > { %1501 = vmax.xlane.f32.xlu0 %v1500_v21  ;;  %1504 = vmax.xlane.f32.xlu1 %v1503_v45 }
 0x8a4   : > { %1507 = vmax.xlane.f32.xlu0 %v1506_v46  ;;  %1510 = vmax.xlane.f32.xlu1 %v1509_v47 }
 0x91d   : > { %v1490_v50 = vpop.xlane.xlu0 %1489 }
 0x91e   : > { %v1512_v51 = vsub.f32 %v1457_v20, %v1490_v50 }
 0x920   : > { %v1520_v53 = vmul.f32 1.442695, %v1512_v51 }
 0x921   : > { %v1496_v29 = vpop.xlane.xlu0 %1495  ;;  %v1493_v38 = vpop.xlane.xlu1 %1492 }
 0x922   : > { %v1514_v52 = vsub.f32 %v2921_v33, %v1496_v29  ;;  %v1513_v55 = vsub.f32 %v1460_v36, %v1493_v38  ;;  %v3682_v33 = vpop.f32.mrf.mxu1 }
 0x923   : > { %v1872_v42 = vsel %vm746_vm2, %v3682_v33, -inf }
 0x924   : > { %v1524_v54 = vmul.f32 1.442695, %v1514_v52  ;;  %v1522_v39 = vmul.f32 1.442695, %v1513_v55  ;;  %v3686_v34 = vpop.f32.mrf.mxu1 }
 0x925   : > { %v1499_v56 = vpop.xlane.xlu0 %1498  ;;  %v1866_v40 = vsel %vm746_vm2, %v3686_v34, -inf }
 0x926   : > { %3130 = vpow2.f32 %v1524_v54  ;;  %v1515_v57 = vsub.f32 %v2922_v35, %v1499_v56  ;;  %v3692_v37 = vpop.f32.mrf.mxu1 }
 0x927   : > { %3132 = vpow2.f32 %v1520_v53 }
 0x928   : > { %v1526_v48 = vmul.f32 1.442695, %v1515_v57 }
 0x929   : > { %v1502_v58 = vpop.xlane.xlu0 %1501  ;;  %v1505_v15 = vpop.xlane.xlu1 %1504 }
 0x92a   : > { %3134 = vpow2.f32 %v1526_v48  ;;  %v1516_v59 = vsub.f32 %v1473_v28, %v1502_v58  ;;  %v1517_v18 = vsub.f32 %v1476_v44, %v1505_v15  ;;  %v3698_v28 = vpop.f32.mrf.mxu1  ;;  %v1875_v44 = vsel %vm746_vm2, %v3692_v37, -inf }
 0x92b   : > { %3136 = vpow2.f32 %v1522_v39  ;;  %v1869_v50 = vsel %vm746_vm2, %v3698_v28, -inf }
 0x92c   : > { %v1528_v62 = vmul.f32 1.442695, %v1516_v59  ;;  %v1530_v22 = vmul.f32 1.442695, %v1517_v18 }
 0x92d   : > { %v1508_v60 = vpop.xlane.xlu0 %1507  ;;  %v1511_v16 = vpop.xlane.xlu1 %1510 }
 0x92e   : > { %v1518_v61 = vsub.f32 %v2925_v41, %v1508_v60  ;;  %v1519_v17 = vsub.f32 %v2926_v43, %v1511_v16  ;;  %v3702_v43 = vpop.f32.mrf.mxu1 }
 0x92f   : > { %v1884_v46 = vsel %vm746_vm2, %v3702_v43, -inf }
 0x930   : > { %v1532_v49 = vmul.f32 1.442695, %v1518_v61  ;;  %v1534_v19 = vmul.f32 1.442695, %v1519_v17  ;;  %v3706_v21 = vpop.f32.mrf.mxu1 }
 0x931   : > { %v1878_v45 = vsel %vm746_vm2, %v3706_v21, -inf }
 0x932   : > { %3138 = vpow2.f32 %v1532_v49  ;;  %v3714_v47 = vpop.f32.mrf.mxu1 }
 0x933   : > { %v3652_v63 = vpop.eup %3130  ;;  %3140 = vpow2.f32 %v1528_v62  ;;  %v1887_v38 = vsel %vm746_vm2, %v3714_v47, -inf }
 0x934   : > { %v1542_v1 = vsel %vm746_vm2, %v3652_v63, 0.0  ;;  %v3656_v2 = vpop.eup %3132  ;;  %3142 = vpow2.f32 %v1534_v19  ;;  %v3718_v51 = vpop.f32.mrf.mxu1 }
 0x935   : > { %1543 = vadd.xlane.f32.xlu0 %v1542_v1  ;;  %v1536_v4 = vsel %vm746_vm2, %v3656_v2, 0.0  ;;  %3144 = vpow2.f32 %v1530_v22  ;;  %v1881_v29 = vsel %vm746_vm2, %v3718_v51, -inf }
 0x937   : > { %v3658_v3 = vpop.eup %3134 }
 0x938   : > { %v1545_v5 = vsel %vm746_vm2, %v3658_v3, 0.0  ;;  %v3664_v6 = vpop.eup %3136 }
 0x939   : > { %1537 = vadd.xlane.f32.xlu0 %v1536_v4  ;;  %1546 = vadd.xlane.f32.xlu1 %v1545_v5  ;;  %v1539_v8 = vsel %vm746_vm2, %v3664_v6, 0.0 }
 0x93d   : > { %1540 = vadd.xlane.f32.xlu1 %v1539_v8 }
 0x93f   : > { %v3668_v9 = vpop.eup %3138 }
 0x940   : > { %v1554_v11 = vsel %vm746_vm2, %v3668_v9, 0.0  ;;  %v3672_v13 = vpop.eup %3140 }
 0x941   : > { %1555 = vadd.xlane.f32.xlu0 %v1554_v11  ;;  %v1548_v14 = vsel %vm746_vm2, %v3672_v13, 0.0  ;;  %v3684_v20 = vpop.eup %3142 }
 0x942   : > { %v1557_v35 = vsel %vm746_vm2, %v3684_v20, 0.0  ;;  %v3690_v36 = vpop.eup %3144 }
 0x943   : > { %v1551_v41 = vsel %vm746_vm2, %v3690_v36, 0.0 }
 0x945   : > { %1549 = vadd.xlane.f32.xlu0 %v1548_v14 }
 0x94e   : > { %1584 = vrot.lane.b32.xlu1 %v3436_v10, %s3267_s12 }
 0x952   : > { %1582 = vrot.lane.b32.xlu1 %v3440_v12, %s3267_s12 }
 0x95b   : > { %1586 = vrot.lane.b32.xlu0 %v3434_v7, %s3267_s12 }
 0x976   : > { %1558 = vadd.xlane.f32.xlu1 %v1557_v35 }
 0x97a   : > { %1867 = vmax.xlane.f32.xlu0 %v1866_v40  ;;  %1552 = vadd.xlane.f32.xlu1 %v1551_v41 }
 0x97e   : > { %1873 = vmax.xlane.f32.xlu0 %v1872_v42 }
 0x982   : > { %1876 = vmax.xlane.f32.xlu0 %v1875_v44 }
 0x986   : > { %1879 = vmax.xlane.f32.xlu0 %v1878_v45 }
 0x98a   : > { %1885 = vmax.xlane.f32.xlu0 %v1884_v46 }
 0x98b   : > { %1580 = vrot.lane.b32.xlu1 %v3430_v0, %s3267_s12 }
 0x9af   : > { %1870 = vmax.xlane.f32.xlu1 %v1869_v50 }
 0x9b3   : > { %1882 = vmax.xlane.f32.xlu1 %v1881_v29 }
 0x9b7   : > { %1888 = vmax.xlane.f32.xlu1 %v1887_v38 }
 0x9be   : > { %v1544_v52 = vpop.xlane.xlu0 %1543 }
 0x9c2   : > { %v1538_v53 = vpop.xlane.xlu0 %1537  ;;  %v1547_v54 = vpop.xlane.xlu1 %1546 }
 0x9c3   : > { %3146 = vrcp.f32 %v1538_v53 }
 0x9c6   : > { %v1541_v55 = vpop.xlane.xlu1 %1540 }
 0x9c7   : > { %3148 = vrcp.f32 %v1541_v55 }
 0x9c8   : > { %3150 = vrcp.f32 %v1547_v54 }
 0x9c9   : > { %3152 = vrcp.f32 %v1544_v52 }
 0x9ca   : > { %v1556_v56 = vpop.xlane.xlu0 %1555  ;;  %v1585_v48 = vpop.permute.xlu1 %1584 }
 0x9ce   : > { %v1550_v57 = vpop.xlane.xlu0 %1549  ;;  %v1583_v49 = vpop.permute.xlu1 %1582 }
 0x9d0   : > { %v3147_v39 = vpop.eup %3146 }
 0x9d1   : > { %v1568_v60 = vmul.f32 %v3147_v39, %v3656_v2 }
 0x9d2   : > { %v1587_v58 = vpop.permute.xlu0 %1586 }
 0x9d3   : > { %2927 = vmatprep.subr.bf16.mxu0 %v1587_v58 }
 0x9d4   : > { %v3149_v59 = vpop.eup %3148  ;;  %2928 = vmatpush3.bf16.msra.mxu0 %v1587_v58  ;;  %v642_v58 = vld [vmem:[%s4133_s5 + $0x8] sm:$0xf] }
 0x9d5   : > { %2929 = vmatprep.subr.bf16.mxu0 %v1585_v48  ;;  %v1569_v61 = vmul.f32 %v3149_v59, %v3664_v6  ;;  %v3151_v4 = vpop.eup %3150 }
 0x9d6   : > { %v3153_v2 = vpop.eup %3152  ;;  %v1571_v6 = vmul.f32 %v3151_v4, %v3658_v3 }
 0x9d7   : > { %v1576_v62 = vpack.c.bf16 %v1569_v61, %v1568_v60  ;;  %v1570_v16 = vmul.f32 %v3153_v2, %v3652_v63  ;;  %v1686_v60 = vsel %vm1234_vm3, %v642_v58, 0 }
 0x9d8   : > { %2930 = vmatpush3.bf16.msra.mxu0 %v1585_v48 }
 0x9d9   : > { %2931 = vmatprep.subr.bf16.mxu0 %v1583_v49  ;;  %2935 = vmatprep.mubr.msk.bf16.mxu0 %vm746_vm2, %v1576_v62  ;;  %v1577_v18 = vpack.c.bf16 %v1571_v6, %v1570_v16 }
 0x9dc   : > { %2932 = vmatpush3.bf16.msra.mxu0 %v1583_v49 }
 0x9ff   : > { %v1559_v1 = vpop.xlane.xlu1 %1558 }
 0xa00   : > { %3154 = vrcp.f32 %v1559_v1 }
 0xa01   : > { %3156 = vrcp.f32 %v1550_v57 }
 0xa02   : > { %3158 = vrcp.f32 %v1556_v56 }
 0xa03   : > { %v1868_v5 = vpop.xlane.xlu0 %1867  ;;  %v1553_v8 = vpop.xlane.xlu1 %1552 }
 0xa04   : > { %3160 = vrcp.f32 %v1553_v8  ;;  %v1890_v11 = vsub.f32 %v3686_v34, %v1868_v5 }
 0xa06   : > { %v1898_v19 = vmul.f32 1.442695, %v1890_v11 }
 0xa07   : > { %v1874_v14 = vpop.xlane.xlu0 %1873  ;;  %v1581_v15 = vpop.permute.xlu1 %1580 }
 0xa08   : > { %v1892_v17 = vsub.f32 %v3682_v33, %v1874_v14  ;;  %2933 = vmatprep.subr.bf16.mxu0 %v1581_v15 }
 0xa09   : > { %2934 = vmatpush3.bf16.msra.mxu0 %v1581_v15 }
 0xa0a   : > { %v1902_v22 = vmul.f32 1.442695, %v1892_v17  ;;  %3021 = vmatprep.subr.msk.bf16.mxu0 %vm1234_vm3, %v642_v58 }
 0xa0b   : > { %v1877_v35 = vpop.xlane.xlu0 %1876 }
 0xa0c   : > { %3162 = vpow2.f32 %v1902_v22  ;;  %v1893_v40 = vsub.f32 %v3692_v37, %v1877_v35  ;;  %2936 = vmatmul.mubr.msk.bf16.vlgmr.msra.gmra.mxu0 %vm746_vm2, %v1577_v18 }
 0xa0d   : > { %v3155_v3 = vpop.eup %3154  ;;  %3164 = vpow2.f32 %v1898_v19  ;;  %2944 = vmatpush3.bf16.msra.mxu0 %v1686_v60 }
 0xa0e   : > { %v1904_v34 = vmul.f32 1.442695, %v1893_v40  ;;  %v3157_v41 = vpop.eup %3156  ;;  %v1575_v33 = vmul.f32 %v3155_v3, %v3684_v20 }
 0xa0f   : > { %v1880_v42 = vpop.xlane.xlu0 %1879  ;;  %v3159_v44 = vpop.eup %3158  ;;  %v1572_v46 = vmul.f32 %v3157_v41, %v3672_v13 }
 0xa10   : > { %3166 = vpow2.f32 %v1904_v34  ;;  %v1894_v45 = vsub.f32 %v3706_v21, %v1880_v42  ;;  %v1574_v37 = vmul.f32 %v3159_v44, %v3668_v9 }
 0xa11   : > { %v3161_v63 = vpop.eup %3160 }
 0xa12   : > { %v1573_v50 = vmul.f32 %v3161_v63, %v3690_v36  ;;  %v1579_v53 = vpack.c.bf16 %v1575_v33, %v1574_v37  ;;  %v1906_v54 = vmul.f32 1.442695, %v1894_v45 }
 0xa13   : > { %v1886_v29 = vpop.xlane.xlu0 %1885 }
 0xa14   : > { %v1896_v38 = vsub.f32 %v3702_v43, %v1886_v29  ;;  %v1578_v52 = vpack.c.bf16 %v1573_v50, %v1572_v46 }
 0xa16   : > { %v1910_v55 = vmul.f32 1.442695, %v1896_v38  ;;  %2939 = vmatprep.mubr.msk.bf16.mxu0 %vm746_vm2, %v1578_v52 }
 0xa17   : > { %2940 = vmatmul.mubr.msk.bf16.gmra.mxu0 %vm746_vm2, %v1579_v53 }
 0xa18   : > { %3168 = vpow2.f32 %v1910_v55 }
 0xa19   : > { %v3741_v20 = vpop.eup %3162  ;;  %3170 = vpow2.f32 %v1906_v54 }
 0xa1a   : > { %v1920_v13 = vsel %vm746_vm2, %v3741_v20, 0.0  ;;  %v3745_v36 = vpop.eup %3164 }
 0xa1b   : > { %1921 = vadd.xlane.f32.xlu0 %v1920_v13  ;;  %v1914_v43 = vsel %vm746_vm2, %v3745_v36, 0.0 }
 0xa1d   : > { %v3747_v9 = vpop.eup %3166 }
 0xa1e   : > { %v1923_v21 = vsel %vm746_vm2, %v3747_v9, 0.0 }
 0xa1f   : > { %1915 = vadd.xlane.f32.xlu0 %v1914_v43  ;;  %1924 = vadd.xlane.f32.xlu1 %v1923_v21 }
 0xa25   : > { %v3753_v56 = vpop.eup %3168 }
 0xa26   : > { %v1932_v57 = vsel %vm746_vm2, %v3753_v56, 0.0  ;;  %v3757_v39 = vpop.eup %3170 }
 0xa27   : > { %1933 = vadd.xlane.f32.xlu0 %v1932_v57  ;;  %v1926_v48 = vsel %vm746_vm2, %v3757_v39, 0.0 }
 0xa2b   : > { %1927 = vadd.xlane.f32.xlu0 %v1926_v48 }
 0xa38   : > { %v1871_v59 = vpop.xlane.xlu1 %1870 }
 0xa39   : > { %v1891_v61 = vsub.f32 %v3698_v28, %v1871_v59 }
 0xa3b   : > { %v1900_v62 = vmul.f32 1.442695, %v1891_v61 }
 0xa3c   : > { %v1883_v4 = vpop.xlane.xlu1 %1882 }
 0xa3d   : > { %3172 = vpow2.f32 %v1900_v62  ;;  %v1895_v8 = vsub.f32 %v3718_v51, %v1883_v4  ;;  %v3785_v51 = vpop.f32.mrf.mxu0 }
 0xa3f   : > { %v1908_v6 = vmul.f32 1.442695, %v1895_v8  ;;  %v3787_v16 = vpop.f32.mrf.mxu0 }
 0xa40   : > { %v1889_v5 = vpop.xlane.xlu1 %1888 }
 0xa41   : > { %1964 = vrot.lane.b32.xlu0 %v3434_v7, %s3268_s15  ;;  %v1897_v28 = vsub.f32 %v3714_v47, %v1889_v5  ;;  %v3789_v18 = vpop.f32.mrf.mxu0 }
 0xa43   : > { %v1912_v2 = vmul.f32 1.442695, %v1897_v28  ;;  %v3791_v22 = vpop.f32.mrf.mxu0 }
 0xa45   : > { %3174 = vpow2.f32 %v1912_v2  ;;  %v3793_v35 = vpop.f32.mrf.mxu0 }
 0xa46   : > { %3176 = vpow2.f32 %v1908_v6 }
 0xa47   : > { %v3795_v40 = vpop.f32.mrf.mxu0 }
 0xa49   : > { %v3797_v3 = vpop.f32.mrf.mxu0 }
 0xa4a   : > { %v3768_v49 = vpop.eup %3172 }
 0xa4b   : > { %v1917_v1 = vsel %vm746_vm2, %v3768_v49, 0.0 }
 0xa4c   : > { %1918 = vadd.xlane.f32.xlu1 %v1917_v1 }
 0xa52   : > { %v3776_v7 = vpop.eup %3174 }
 0xa53   : > { %v1935_v11 = vsel %vm746_vm2, %v3776_v7, 0.0  ;;  %v3780_v14 = vpop.eup %3176 }
 0xa5d   : > { %1962 = vrot.lane.b32.xlu1 %v3436_v10, %s3268_s15  ;;  %v1929_v10 = vsel %vm746_vm2, %v3780_v14, 0.0 }
 0xa61   : > { %1960 = vrot.lane.b32.xlu1 %v3440_v12, %s3268_s15 }
 0xa85   : > { %1936 = vadd.xlane.f32.xlu1 %v1935_v11 }
 0xa89   : > { %1930 = vadd.xlane.f32.xlu1 %v1929_v10 }
 0xa9a   : > { %1958 = vrot.lane.b32.xlu1 %v3430_v0, %s3268_s15  ;;  %v3799_v0 = vpop.f32.mrf.mxu0 }
 0xaa4   : > { %v1922_v12 = vpop.xlane.xlu0 %1921 }
 0xaa8   : > { %v1916_v47 = vpop.xlane.xlu0 %1915  ;;  %v1925_v44 = vpop.xlane.xlu1 %1924 }
 0xaa9   : > { %3178 = vrcp.f32 %v1916_v47 }
 0xab0   : > { %v1934_v15 = vpop.xlane.xlu0 %1933 }
 0xab4   : > { %v1928_v17 = vpop.xlane.xlu0 %1927 }
 0xab6   : > { %v3179_v13 = vpop.eup %3178 }
 0xab7   : > { %v1946_v21 = vmul.f32 %v3179_v13, %v3745_v36 }
 0xab8   : > { %v1965_v19 = vpop.permute.xlu0 %1964 }
 0xab9   : > { %2969 = vmatprep.subr.bf16.mxu0 %v1965_v19 }
 0xacc   : > { %v2937_v34 = vpop.f32.mrf.mxu0 }
 0xace   : > { %v1638_v41 = vpop.f32.mrf.mxu0 }
 0xad0   : > { %v2938_v42 = vpop.f32.mrf.mxu0 }
 0xad1   : > { %v1670_v45 = vpack.c.bf16 %v2938_v42, %v2937_v34 }
 0xad2   : > { %v1641_v63 = vpop.f32.mrf.mxu0 }
 0xad3   : > { %v1669_v33 = vpack.c.bf16 %v1641_v63, %v1638_v41  ;;  %v1356_v41 = vadd.f32 %v3791_v22, %v3634_v26  ;;  %v1372_v26 = vadd.f32 %v3799_v0, %v3642_v32 }
 0xad5   : > { %2945 = vmatprep.mubr.msk.bf16.mxu0 %vm656_vm1, %v1669_v33  ;;  %v1919_v46 = vpop.xlane.xlu1 %1918 }
 0xad6   : > { %3180 = vrcp.f32 %v1919_v46  ;;  %2946 = vmatmul.mubr.msk.bf16.vlgmr.msra.gmra.mxu0 %vm656_vm1, %v1670_v45 }
 0xad7   : > { %2970 = vmatpush3.bf16.msra.mxu0 %v1965_v19  ;;  %v2941_v50 = vpop.f32.mrf.mxu0  ;;  %3182 = vrcp.f32 %v1925_v44 }
 0xad8   : > { %3184 = vrcp.f32 %v1922_v12 }
 0xad9   : > { %v1654_v29 = vpop.f32.mrf.mxu0  ;;  %v1963_v37 = vpop.permute.xlu1 %1962 }
 0xada   : > { %2971 = vmatprep.subr.bf16.mxu0 %v1963_v37 }
 0xadb   : > { %v2942_v38 = vpop.f32.mrf.mxu0  ;;  %2972 = vmatpush3.bf16.msra.mxu0 %v1963_v37 }
 0xadc   : > { %v1672_v55 = vpack.c.bf16 %v2942_v38, %v2941_v50 }
 0xadd   : > { %v1657_v52 = vpop.f32.mrf.mxu0  ;;  %v1961_v53 = vpop.permute.xlu1 %1960 }
 0xade   : > { %v1671_v54 = vpack.c.bf16 %v1657_v52, %v1654_v29  ;;  %2973 = vmatprep.subr.bf16.mxu0 %v1961_v53 }
 0xadf   : > { %2974 = vmatpush3.bf16.msra.mxu0 %v1961_v53 }
 0xae0   : > { %2949 = vmatprep.mubr.msk.bf16.mxu0 %vm656_vm1, %v1671_v54 }
 0xae1   : > { %2950 = vmatmul.mubr.msk.bf16.gmra.mxu0 %vm656_vm1, %v1672_v55  ;;  %v2705_v55 = vld [vmem:[%s4134_s6] ss:$0 sm:$0xff] }
 0xae3   : > { %v3181_v43 = vpop.eup %3180 }
 0xae4   : > { %v1947_v57 = vmul.f32 %v3181_v43, %v3768_v49  ;;  %v3183_v59 = vpop.eup %3182 }
 0xae5   : > { %v3185_v61 = vpop.eup %3184  ;;  %v1949_v62 = vmul.f32 %v3183_v59, %v3747_v9 }
 0xae6   : > { %v1954_v48 = vpack.c.bf16 %v1947_v57, %v1946_v21  ;;  %v1948_v36 = vmul.f32 %v3185_v61, %v3741_v20  ;;  %v643_v20 = vld [vmem:[%s4133_s5 + $0xc] sm:$0xf] }
 0xae8   : > { %2977 = vmatprep.mubr.msk.bf16.mxu0 %vm746_vm2, %v1954_v48  ;;  %v1955_v49 = vpack.c.bf16 %v1949_v62, %v1948_v36 }
 0xb0e   : > { %v1937_v58 = vpop.xlane.xlu1 %1936 }
 0xb0f   : > { %3186 = vrcp.f32 %v1937_v58 }
 0xb10   : > { %3188 = vrcp.f32 %v1928_v17  ;;  %v1364_v17 = vadd.f32 %v3789_v18, %v3632_v25  ;;  %v1380_v25 = vadd.f32 %v3797_v3, %v3640_v31 }
 0xb11   : > { %3190 = vrcp.f32 %v1934_v15 }
 0xb12   : > { %v1931_v60 = vpop.xlane.xlu1 %1930 }
 0xb13   : > { %3192 = vrcp.f32 %v1931_v60  ;;  %v3242_v60 = vld [vmem:[%s3345_s22] sm:$0xff] }
 0xb16   : > { %v1959_v1 = vpop.permute.xlu1 %1958 }
 0xb17   : > { %2975 = vmatprep.subr.bf16.mxu0 %v1959_v1 }
 0xb18   : > { %2976 = vmatpush3.bf16.msra.mxu0 %v1959_v1  ;;  %v3243_v1 = vld [vmem:[%s3345_s22 + $0x10] sm:$0xff] }
 0xb19   : > { %3026 = vmatprep.subr.msk.bf16.mxu0 %vm1234_vm3, %v643_v20 }
 0xb1b   : > { %2978 = vmatmul.mubr.msk.bf16.vlgmr.msra.gmra.mxu0 %vm746_vm2, %v1955_v49 }
 0xb1c   : > { %v3187_v4 = vpop.eup %3186 }
 0xb1d   : > { %v3189_v5 = vpop.eup %3188  ;;  %v1953_v2 = vmul.f32 %v3187_v4, %v3776_v7  ;;  %v2064_v7 = vsel %vm1234_vm3, %v643_v20, 0 }
 0xb1e   : > { %v3191_v28 = vpop.eup %3190  ;;  %v1950_v6 = vmul.f32 %v3189_v5, %v3757_v39  ;;  %2986 = vmatpush3.bf16.msra.mxu0 %v2064_v7  ;;  %v1361_v39 = vadd.f32 %v3785_v51, %v3628_v23  ;;  %v1377_v23 = vadd.f32 %v3793_v35, %v3636_v27 }
 0xb1f   : > { %v1952_v9 = vmul.f32 %v3191_v28, %v3753_v56  ;;  %v1353_v56 = vadd.f32 %v3787_v16, %v3630_v24  ;;  %v1369_v24 = vadd.f32 %v3795_v40, %v3638_v30  ;;  %v3244_v28 = vld [vmem:[%s3345_s22 + $0x8] sm:$0xff] }
 0xb20   : > { %v3193_v8 = vpop.eup %3192 }
 0xb21   : > { %v1951_v11 = vmul.f32 %v3193_v8, %v3780_v14  ;;  %v1957_v12 = vpack.c.bf16 %v1953_v2, %v1952_v9 }
 0xb23   : > { %v1956_v10 = vpack.c.bf16 %v1951_v11, %v1950_v6  ;;  %v3245_v6 = vld [vmem:[%s3345_s22 + $0x18] sm:$0xff] }
 0xb25   : > { %2981 = vmatprep.mubr.msk.bf16.mxu0 %vm746_vm2, %v1956_v10 }
 0xb26   : > { %2982 = vmatmul.mubr.msk.bf16.gmra.mxu0 %vm746_vm2, %v1957_v12 }
 0xb96   : > { %v2947_v14 = vpop.f32.mrf.mxu0 }
 0xb97   : > { %v1755_v47 = vadd.f32 %v2947_v14, %v1361_v39 }
 0xb98   : > { %v1722_v15 = vpop.f32.mrf.mxu0 }
 0xb99   : > { %v1753_v19 = vadd.f32 %v1722_v15, %v1353_v56 }
 0xb9a   : > { %v2948_v34 = vpop.f32.mrf.mxu0 }
 0xb9b   : > { %v1756_v42 = vadd.f32 %v2948_v34, %v1364_v17 }
 0xb9c   : > { %v1725_v44 = vpop.f32.mrf.mxu0 }
 0xb9d   : > { %v1754_v63 = vadd.f32 %v1725_v44, %v1356_v41 }
 0xba1   : > { %v2951_v51 = vpop.f32.mrf.mxu0 }
 0xba2   : > { %v1759_v16 = vadd.f32 %v2951_v51, %v1377_v23  ;;  %v3247_v23 = vld [vmem:[%s3345_s22 + $0x30] sm:$0xff] }
 0xba3   : > { %v1738_v33 = vpop.f32.mrf.mxu0 }
 0xba4   : > { %v1757_v18 = vadd.f32 %v1738_v33, %v1369_v24  ;;  %v3248_v24 = vld [vmem:[%s3345_s22 + $0x28] sm:$0xff]  ;;  %v3249_v33 = vld [vmem:[%s3345_s22 + $0x38] sm:$0xff] }
 0xba5   : > { %v2952_v45 = vpop.f32.mrf.mxu0 }
 0xba6   : > { %v1760_v22 = vadd.f32 %v2952_v45, %v1380_v25 }
 0xba7   : > { %v1741_v46 = vpop.f32.mrf.mxu0 }
 0xba8   : > { %v1758_v50 = vadd.f32 %v1741_v46, %v1372_v26 }
 0xbdb   : > { %v2979_v29 = vpop.f32.mrf.mxu0 }
 0xbdd   : > { %v2016_v37 = vpop.f32.mrf.mxu0 }
 0xbdf   : > { %v2980_v27 = vpop.f32.mrf.mxu0 }
 0xbe0   : > { %v2048_v52 = vpack.c.bf16 %v2980_v27, %v2979_v29 }
 0xbe1   : > { %v2019_v35 = vpop.f32.mrf.mxu0 }
 0xbe2   : > { %v2047_v38 = vpack.c.bf16 %v2019_v35, %v2016_v37 }
 0xbe4   : > { %2987 = vmatprep.mubr.msk.bf16.mxu0 %vm656_vm1, %v2047_v38 }
 0xbe5   : > { %2988 = vmatmul.mubr.msk.bf16.vlgmr.msra.gmra.mxu0 %vm656_vm1, %v2048_v52 }
 0xbe6   : > { %v2983_v30 = vpop.f32.mrf.mxu0 }
 0xbe8   : > { %v2032_v31 = vpop.f32.mrf.mxu0 }
 0xbea   : > { %v2984_v40 = vpop.f32.mrf.mxu0 }
 0xbeb   : > { %v2050_v32 = vpack.c.bf16 %v2984_v40, %v2983_v30 }
 0xbec   : > { %v2035_v3 = vpop.f32.mrf.mxu0 }
 0xbed   : > { %v2049_v53 = vpack.c.bf16 %v2035_v3, %v2032_v31 }
 0xbef   : > { %2991 = vmatprep.mubr.msk.bf16.mxu0 %vm656_vm1, %v2049_v53 }
 0xbf0   : > { %2992 = vmatmul.mubr.msk.bf16.gmra.mxu0 %vm656_vm1, %v2050_v32 }
 0xca5   : > { %v2989_v0 = vpop.f32.mrf.mxu0 }
 0xca6   : > { %v2133_v54 = vadd.f32 %v2989_v0, %v1755_v47 }
 0xca7   : > { %v2100_v13 = vpop.f32.mrf.mxu0 }
 0xca8   : > { %v2131_v43 = vadd.f32 %v2100_v13, %v1753_v19  ;;  %v2148_v57 = vadd.f32 %v2705_v55, %v2133_v54  ;;  %v3246_v19 = vld [vmem:[%s3345_s22 + $0x20] sm:$0xff] }
 0xca9   : > { %v2990_v21 = vpop.f32.mrf.mxu0 }
 0xcaa   : > { %v2146_v48 = vadd.f32 %v2705_v55, %v2131_v43  ;;  %v2134_v58 = vadd.f32 %v2990_v21, %v1756_v42  ;;  %v3849_v36 = vadd.f32 %v3243_v1, %v2148_v57 }
 0xcab   : > { %v2103_v59 = vpop.f32.mrf.mxu0 }
 0xcac   : > { %v3846_v61 = vadd.f32 %v3242_v60, %v2146_v48  ;;  %v2132_v62 = vadd.f32 %v2103_v59, %v1754_v63  ;;  %v2149_v49 = vadd.f32 %v2705_v55, %v2134_v58  ;;  %v2170_v12 = vsel %vm398_vm0, %v3849_v36, 0.0 }
 0xcae   : > { %v2147_v4 = vadd.f32 %v2705_v55, %v2132_v62  ;;  %v2164_v5 = vsel %vm398_vm0, %v3846_v61, 0.0  ;;  %v3857_v11 = vadd.f32 %v3245_v6, %v2149_v49 }
 0xcaf   : > { %2165 = vadd.xlane.f32.xlu0 %v2164_v5 }
 0xcb0   : > { %v3854_v8 = vadd.f32 %v3244_v28, %v2147_v4  ;;  %v2993_v2 = vpop.f32.mrf.mxu0  ;;  %v2173_v17 = vsel %vm398_vm0, %v3857_v11, 0.0 }
 0xcb1   : > { %v2137_v9 = vadd.f32 %v2993_v2, %v1759_v16 }
 0xcb2   : > { %v2116_v10 = vpop.f32.mrf.mxu0  ;;  %v2167_v20 = vsel %vm398_vm0, %v3854_v8, 0.0 }
 0xcb3   : > { %v2135_v7 = vadd.f32 %v2116_v10, %v1757_v18  ;;  %2171 = vadd.xlane.f32.xlu0 %v2170_v12  ;;  %2168 = vadd.xlane.f32.xlu1 %v2167_v20  ;;  %v2152_v47 = vadd.f32 %v2705_v55, %v2137_v9 }
 0xcb4   : > { %v2994_v39 = vpop.f32.mrf.mxu0 }
 0xcb5   : > { %v2150_v14 = vadd.f32 %v2705_v55, %v2135_v7  ;;  %v2138_v56 = vadd.f32 %v2994_v39, %v1760_v22  ;;  %v3871_v51 = vadd.f32 %v3247_v23, %v2152_v47 }
 0xcb6   : > { %v2119_v15 = vpop.f32.mrf.mxu0 }
 0xcb7   : > { %v3866_v34 = vadd.f32 %v3246_v19, %v2150_v14  ;;  %v2136_v41 = vadd.f32 %v2119_v15, %v1758_v50  ;;  %2174 = vadd.xlane.f32.xlu0 %v2173_v17  ;;  %v2153_v42 = vadd.f32 %v2705_v55, %v2138_v56  ;;  %v2182_v45 = vsel %vm398_vm0, %v3871_v51, 0.0  ;;  %v3048_v14 = vld [vmem:[%s4137_s9 + $0x8] sm:$0xff]   ;;  %v3049_v56 = vld [vmem:[%s4137_s9] sm:$0xff]  }
 0xcb8   : > { %2995 = vmatprep.subr.bf16.mxu1 %v3048_v14 }
 0xcb9   : > { %v2151_v44 = vadd.f32 %v2705_v55, %v2136_v41  ;;  %v2176_v63 = vsel %vm398_vm0, %v3866_v34, 0.0  ;;  %v3877_v25 = vadd.f32 %v3249_v33, %v2153_v42  ;;  %2996 = vmatpush3.bf16.msra.mxu1 %v3048_v14 }
 0xcba   : > { %2997 = vmatprep.subr.bf16.mxu1 %v3049_v56 }
 0xcbb   : > { %v3874_v16 = vadd.f32 %v3248_v24, %v2151_v44  ;;  %2177 = vadd.xlane.f32.xlu0 %v2176_v63  ;;  %v2185_v26 = vsel %vm398_vm0, %v3877_v25, 0.0 }
 0xcbd   : > { %v2179_v18 = vsel %vm398_vm0, %v3874_v16, 0.0  ;;  %2998 = vmatpush3.bf16.msra.mxu1 %v3049_v56 }
 0xcbe   : > { %2180 = vadd.xlane.f32.xlu1 %v2179_v18 }
 0xcbf   : > { %2183 = vadd.xlane.f32.xlu0 %v2182_v45 }
 0xcc2   : > { %2186 = vadd.xlane.f32.xlu1 %v2185_v26 }
 0xd38   : > { %v2166_v22 = vpop.xlane.xlu0 %2165 }
 0xd39   : > { %v2188_v46 = vmul.f32 0.03125, %v2166_v22 }
 0xd3b   : > { %v3886_v50 = vsub.f32 %v3846_v61, %v2188_v46 }
 0xd3c   : > { %v2172_v29 = vpop.xlane.xlu0 %2171  ;;  %v2169_v37 = vpop.xlane.xlu1 %2168 }
 0xd3d   : > { %v2190_v27 = vmul.f32 0.03125, %v2172_v29  ;;  %v2189_v35 = vmul.f32 0.03125, %v2169_v37  ;;  %v2204_v38 = vmul.f32 %v3886_v50, %v3886_v50 }
 0xd3f   : > { %v3891_v52 = vsub.f32 %v3849_v36, %v2190_v27  ;;  %v3894_v30 = vsub.f32 %v3854_v8, %v2189_v35  ;;  %v2212_v31 = vsel %vm398_vm0, %v2204_v38, 0.0 }
 0xd40   : > { %v2175_v40 = vpop.xlane.xlu0 %2174  ;;  %2213 = vadd.xlane.f32.xlu0 %v2212_v31 }
 0xd41   : > { %v2191_v3 = vmul.f32 0.03125, %v2175_v40  ;;  %v2206_v53 = vmul.f32 %v3891_v52, %v3891_v52  ;;  %v2205_v32 = vmul.f32 %v3894_v30, %v3894_v30 }
 0xd43   : > { %v3902_v0 = vsub.f32 %v3857_v11, %v2191_v3  ;;  %v2218_v54 = vsel %vm398_vm0, %v2206_v53, 0.0  ;;  %v2215_v55 = vsel %vm398_vm0, %v2205_v32, 0.0  ;;  %v2706_v32 = vld [vmem:[%s4135_s7] ss:$0 sm:$0xff] }
 0xd44   : > { %2219 = vadd.xlane.f32.xlu0 %v2218_v54  ;;  %v2178_v13 = vpop.xlane.xlu0 %2177  ;;  %2216 = vadd.xlane.f32.xlu1 %v2215_v55 }
 0xd45   : > { %v2192_v43 = vmul.f32 0.03125, %v2178_v13  ;;  %v2207_v21 = vmul.f32 %v3902_v0, %v3902_v0 }
 0xd47   : > { %v3909_v57 = vsub.f32 %v3866_v34, %v2192_v43  ;;  %v2181_v48 = vpop.xlane.xlu1 %2180  ;;  %v2221_v58 = vsel %vm398_vm0, %v2207_v21, 0.0 }
 0xd48   : > { %v2193_v59 = vmul.f32 0.03125, %v2181_v48  ;;  %v2184_v60 = vpop.xlane.xlu0 %2183  ;;  %2222 = vadd.xlane.f32.xlu1 %v2221_v58  ;;  %v2707_v58 = vld [vmem:[%s4136_s8] ss:$0 sm:$0xff] }
 0xd49   : > { %v2194_v62 = vmul.f32 0.03125, %v2184_v60  ;;  %v2208_v1 = vmul.f32 %v3909_v57, %v3909_v57 }
 0xd4a   : > { %v3915_v49 = vsub.f32 %v3874_v16, %v2193_v59 }
 0xd4b   : > { %v3918_v4 = vsub.f32 %v3871_v51, %v2194_v62  ;;  %v2187_v5 = vpop.xlane.xlu1 %2186  ;;  %v2224_v28 = vsel %vm398_vm0, %v2208_v1, 0.0 }
 0xd4c   : > { %v2195_v2 = vmul.f32 0.03125, %v2187_v5  ;;  %2225 = vadd.xlane.f32.xlu0 %v2224_v28  ;;  %v2209_v6 = vmul.f32 %v3915_v49, %v3915_v49 }
 0xd4d   : > { %v2210_v9 = vmul.f32 %v3918_v4, %v3918_v4 }
 0xd4e   : > { %v3926_v10 = vsub.f32 %v3877_v25, %v2195_v2  ;;  %v2227_v12 = vsel %vm398_vm0, %v2209_v6, 0.0 }
 0xd4f   : > { %2228 = vadd.xlane.f32.xlu1 %v2227_v12  ;;  %v2230_v20 = vsel %vm398_vm0, %v2210_v9, 0.0 }
 0xd50   : > { %2231 = vadd.xlane.f32.xlu0 %v2230_v20  ;;  %v2211_v7 = vmul.f32 %v3926_v10, %v3926_v10 }
 0xd52   : > { %v2233_v39 = vsel %vm398_vm0, %v2211_v7, 0.0 }
 0xd53   : > { %2234 = vadd.xlane.f32.xlu1 %v2233_v39 }
 0xdc9   : > { %v2214_v47 = vpop.xlane.xlu0 %2213 }
 0xdca   : > { %v2236_v15 = vmul.f32 0.03125, %v2214_v47 }
 0xdcc   : > { %v2244_v17 = vadd.f32 1e-05, %v2236_v15 }
 0xdcd   : > { %v2220_v19 = vpop.xlane.xlu0 %2219  ;;  %v2217_v41 = vpop.xlane.xlu1 %2216 }
 0xdce   : > { %3194 = vrsqrt.f32 %v2244_v17  ;;  %v2238_v42 = vmul.f32 0.03125, %v2220_v19  ;;  %v2237_v44 = vmul.f32 0.03125, %v2217_v41 }
 0xdd0   : > { %v2246_v63 = vadd.f32 1e-05, %v2238_v42  ;;  %v2245_v23 = vadd.f32 1e-05, %v2237_v44 }
 0xdd1   : > { %v2223_v24 = vpop.xlane.xlu1 %2222 }
 0xdd2   : > { %3196 = vrsqrt.f32 %v2246_v63  ;;  %v2239_v33 = vmul.f32 0.03125, %v2223_v24 }
 0xdd3   : > { %3198 = vrsqrt.f32 %v2245_v23 }
 0xdd4   : > { %v2247_v18 = vadd.f32 1e-05, %v2239_v33 }
 0xdd5   : > { %v2226_v45 = vpop.xlane.xlu0 %2225 }
 0xdd6   : > { %3200 = vrsqrt.f32 %v2247_v18  ;;  %v2240_v26 = vmul.f32 0.03125, %v2226_v45 }
 0xdd8   : > { %v2248_v22 = vadd.f32 1e-05, %v2240_v26  ;;  %v2229_v46 = vpop.xlane.xlu1 %2228 }
 0xdd9   : > { %v2241_v29 = vmul.f32 0.03125, %v2229_v46  ;;  %v2232_v37 = vpop.xlane.xlu0 %2231 }
 0xdda   : > { %3202 = vrsqrt.f32 %v2248_v22  ;;  %v2242_v27 = vmul.f32 0.03125, %v2232_v37 }
 0xddb   : > { %v3195_v35 = vpop.eup %3194  ;;  %v2249_v38 = vadd.f32 1e-05, %v2241_v29 }
 0xddc   : > { %v2250_v31 = vadd.f32 1e-05, %v2242_v27  ;;  %v2235_v40 = vpop.xlane.xlu1 %2234  ;;  %v2260_v53 = vmul.f32 %v3195_v35, %v3886_v50 }
 0xddd   : > { %3204 = vrsqrt.f32 %v2249_v38  ;;  %v2243_v3 = vmul.f32 0.03125, %v2235_v40 }
 0xdde   : > { %3206 = vrsqrt.f32 %v2250_v31  ;;  %v2274_v48 = vmul.f32 %v2706_v32, %v2260_v53 }
 0xddf   : > { %v3197_v54 = vpop.eup %3196  ;;  %v2251_v55 = vadd.f32 1e-05, %v2243_v3 }
 0xde0   : > { %v3199_v13 = vpop.eup %3198  ;;  %v2262_v43 = vmul.f32 %v3197_v54, %v3891_v52  ;;  %v2288_v1 = vadd.f32 %v2707_v58, %v2274_v48 }
 0xde1   : > { %3208 = vrsqrt.f32 %v2251_v55  ;;  %v2261_v21 = vmul.f32 %v3199_v13, %v3894_v30 }
 0xde2   : > { %v2276_v60 = vmul.f32 %v2706_v32, %v2262_v43 }
 0xde3   : > { %v3201_v59 = vpop.eup %3200  ;;  %v2275_v50 = vmul.f32 %v2706_v32, %v2261_v21 }
 0xde4   : > { %v2263_v62 = vmul.f32 %v3201_v59, %v3902_v0  ;;  %v2290_v9 = vadd.f32 %v2707_v58, %v2276_v60 }
 0xde5   : > { %v2289_v5 = vadd.f32 %v2707_v58, %v2275_v50 }
 0xde6   : > { %v2277_v28 = vmul.f32 %v2706_v32, %v2263_v62 }
 0xde7   : > { %v3203_v2 = vpop.eup %3202  ;;  %v2296_v6 = vpack.c.bf16 %v2289_v5, %v2288_v1 }
 0xde8   : > { %v2291_v52 = vadd.f32 %v2707_v58, %v2277_v28  ;;  %v2264_v12 = vmul.f32 %v3203_v2, %v3909_v57 }
 0xde9   : > { %2999 = vmatprep.mubr.msk.bf16.mxu1 %vm398_vm0, %v2296_v6 }
 0xdea   : > { %v3205_v30 = vpop.eup %3204  ;;  %v2297_v20 = vpack.c.bf16 %v2291_v52, %v2290_v9  ;;  %v2278_v14 = vmul.f32 %v2706_v32, %v2264_v12 }
 0xdeb   : > { %v3207_v7 = vpop.eup %3206  ;;  %v2265_v39 = vmul.f32 %v3205_v30, %v3915_v49  ;;  %v2708_v49 = vld [vmem:[%s4138_s10] ss:$0 sm:$0xff] }
 0xdec   : > { %3000 = vmatmul.mubr.msk.bf16.vlgmr.msra.gmra.mxu1 %vm398_vm0, %v2297_v20  ;;  %v2266_v0 = vmul.f32 %v3207_v7, %v3918_v4  ;;  %v2292_v15 = vadd.f32 %v2707_v58, %v2278_v14 }
 0xded   : > { %v2279_v56 = vmul.f32 %v2706_v32, %v2265_v39 }
 0xdee   : > { %v3209_v47 = vpop.eup %3208  ;;  %v2280_v41 = vmul.f32 %v2706_v32, %v2266_v0 }
 0xdef   : > { %v2293_v17 = vadd.f32 %v2707_v58, %v2279_v56  ;;  %v2267_v19 = vmul.f32 %v3209_v47, %v3926_v10 }
 0xdf0   : > { %v2294_v44 = vadd.f32 %v2707_v58, %v2280_v41 }
 0xdf1   : > { %v2298_v57 = vpack.c.bf16 %v2293_v17, %v2292_v15  ;;  %v2281_v42 = vmul.f32 %v2706_v32, %v2267_v19 }
 0xdf3   : > { %3003 = vmatprep.mubr.msk.bf16.mxu1 %vm398_vm0, %v2298_v57  ;;  %v2295_v63 = vadd.f32 %v2707_v58, %v2281_v42 }
 0xdf5   : > { %v2299_v23 = vpack.c.bf16 %v2295_v63, %v2294_v44 }
 0xdf7   : > { %3004 = vmatmul.mubr.msk.bf16.gmra.mxu1 %vm398_vm0, %v2299_v23 }
 0xeac   : > { %v3001_v4 = vpop.f32.mrf.mxu1 }
 0xead   : > { %v2378_v24 = vadd.f32 %v3001_v4, %v2708_v49 }
 0xeae   : > { %v2369_v33 = vpop.f32.mrf.mxu1 }
 0xeaf   : > { %v3960_v18 = vsub.f32 0.0, %v2378_v24  ;;  %v2370_v10 = vadd.f32 %v2708_v49, %v2369_v33 }
 0xeb0   : > { %v3002_v45 = vpop.f32.mrf.mxu1 }
 0xeb1   : > { %v3963_v26 = vsub.f32 0.0, %v3960_v18  ;;  %v3965_v22 = vsub.f32 0.0, %v2370_v10  ;;  %v2381_v46 = vadd.f32 %v3002_v45, %v2708_v49 }
 0xeb2   : > { %v2372_v29 = vpop.f32.mrf.mxu1 }
 0xeb3   : > { %v2442_v37 = vand.u32 2147483647, %v3963_v26  ;;  %v3969_v27 = vsub.f32 0.0, %v3965_v22  ;;  %v3971_v35 = vsub.f32 0.0, %v2381_v46  ;;  %v2373_v38 = vadd.f32 %v2708_v49, %v2372_v29 }
 0xeb4   : > { %vm2426_vm4 = vcmp.ne.f32.partialorder %v3963_v26, %v3963_v26 }
 0xeb5   : > { %v2450_v31 = vsub.f32 0.0, %v2442_v37  ;;  %v2440_v40 = vand.u32 2147483647, %v3969_v27  ;;  %v3975_v3 = vsub.f32 0.0, %v3971_v35  ;;  %v3977_v53 = vsub.f32 0.0, %v2373_v38 }
 0xeb6   : > { %vm2424_vm5 = vcmp.ne.f32.partialorder %v3969_v27, %v3969_v27 }
 0xeb7   : > { %v2460_v32 = vmul.f32 1.442695, %v2450_v31  ;;  %v2448_v54 = vsub.f32 0.0, %v2440_v40  ;;  %v3005_v55 = vpop.f32.mrf.mxu1  ;;  %v2443_v13 = vand.u32 2147483647, %v3975_v3  ;;  %v3981_v43 = vsub.f32 0.0, %v3977_v53 }
 0xeb8   : > { %v2394_v48 = vadd.f32 %v3005_v55, %v2708_v49  ;;  %vm2427_vm10 = vcmp.ne.f32.partialorder %v3975_v3, %v3975_v3 }
 0xeb9   : > { %3210 = vpow2.f32 %v2460_v32  ;;  %v2456_v21 = vmul.f32 1.442695, %v2448_v54  ;;  %v2385_v58 = vpop.f32.mrf.mxu1  ;;  %v2451_v59 = vsub.f32 0.0, %v2443_v13  ;;  %v2441_v50 = vand.u32 2147483647, %v3981_v43 }
 0xeba   : > { %v2386_v60 = vadd.f32 %v2708_v49, %v2385_v58  ;;  %v3984_v62 = vsub.f32 0.0, %v2394_v48  ;;  %v2410_v48 = vmax.f32 %v3960_v18, 0.0  ;;  %vm2425_vm11 = vcmp.ne.f32.partialorder %v3981_v43, %v3981_v43 }
 0xebb   : > { %3212 = vpow2.f32 %v2456_v21  ;;  %v3006_v1 = vpop.f32.mrf.mxu1  ;;  %v2462_v5 = vmul.f32 1.442695, %v2451_v59  ;;  %v2449_v28 = vsub.f32 0.0, %v2441_v50  ;;  %v2408_v50 = vmax.f32 %v3965_v22, 0.0 }
 0xebc   : > { %v3986_v2 = vsub.f32 0.0, %v2386_v60  ;;  %v2397_v6 = vadd.f32 %v3006_v1, %v2708_v49  ;;  %v3989_v9 = vsub.f32 0.0, %v3984_v62  ;;  %v2414_v3 = vmax.f32 %v3984_v62, 0.0 }
 0xebd   : > { %v2388_v52 = vpop.f32.mrf.mxu1  ;;  %3214 = vpow2.f32 %v2462_v5  ;;  %v2458_v12 = vmul.f32 1.442695, %v2449_v28  ;;  %v2411_v28 = vmax.f32 %v3971_v35, 0.0 }
 0xebe   : > { %v3992_v30 = vsub.f32 0.0, %v3986_v2  ;;  %v2446_v20 = vand.u32 2147483647, %v3989_v9  ;;  %v3995_v7 = vsub.f32 0.0, %v2397_v6  ;;  %v2389_v39 = vadd.f32 %v2708_v49, %v2388_v52 }
 0xebf   : > { %3216 = vpow2.f32 %v2458_v12  ;;  %vm2430_vm14 = vcmp.ne.f32.partialorder %v3989_v9, %v3989_v9 }
 0xec0   : > { %v2444_v14 = vand.u32 2147483647, %v3992_v30  ;;  %v2454_v0 = vsub.f32 0.0, %v2446_v20  ;;  %v3999_v56 = vsub.f32 0.0, %v3995_v7  ;;  %v4001_v47 = vsub.f32 0.0, %v2389_v39 }
 0xec1   : > { %vm2428_vm15 = vcmp.ne.f32.partialorder %v3992_v30, %v3992_v30  ;;  %v2415_v9 = vmax.f32 %v3995_v7, 0.0 }
 0xec2   : > { %v2452_v15 = vsub.f32 0.0, %v2444_v14  ;;  %v2468_v17 = vmul.f32 1.442695, %v2454_v0  ;;  %v2447_v19 = vand.u32 2147483647, %v3999_v56  ;;  %v4005_v57 = vsub.f32 0.0, %v4001_v47 }
 0xec3   : > { %vm2431_vm2 = vcmp.ne.f32.partialorder %v3999_v56, %v3999_v56 }
 0xec4   : > { %v2464_v41 = vmul.f32 1.442695, %v2452_v15  ;;  %3218 = vpow2.f32 %v2468_v17  ;;  %v2455_v42 = vsub.f32 0.0, %v2447_v19  ;;  %v2445_v63 = vand.u32 2147483647, %v4005_v57 }
 0xec5   : > { %v2409_v15 = vmax.f32 %v3977_v53, 0.0 }
 0xec6   : > { %v3211_v44 = vpop.eup %3210  ;;  %3220 = vpow2.f32 %v2464_v41  ;;  %v2470_v49 = vmul.f32 1.442695, %v2455_v42  ;;  %v2453_v24 = vsub.f32 0.0, %v2445_v63 }
 0xec7   : > { %v2490_v23 = vadd.f32 1.0, %v3211_v44  ;;  %v2493_v38 = vmul.f32 -0.5, %v3211_v44  ;;  %v2496_v55 = vand.u32 2147483647, %v3211_v44 }
 0xec8   : > { %v3213_v4 = vpop.eup %3212  ;;  %v2466_v10 = vmul.f32 1.442695, %v2453_v24 }
 0xec9   : > { %3222 = vlog2.f32 %v2490_v23  ;;  %v2472_v33 = vadd.f32 1.0, %v3213_v4  ;;  %v2475_v31 = vmul.f32 -0.5, %v3213_v4  ;;  %v2494_v54 = vadd.f32 1.0, %v2493_v38 }
 0xeca   : > { %3224 = vpow2.f32 %v2470_v49  ;;  %v3215_v45 = vpop.eup %3214  ;;  %v2478_v58 = vand.u32 2147483647, %v3213_v4  ;;  %vm2497_vm6 = vcmp.lt.f32.partialorder %v2496_v55, 0.0004427343 }
 0xecb   : > { %3226 = vlog2.f32 %v2472_v33  ;;  %v2499_v46 = vadd.f32 1.0, %v3215_v45  ;;  %v2502_v13 = vmul.f32 -0.5, %v3215_v45  ;;  %v2476_v60 = vadd.f32 1.0, %v2475_v31 }
 0xecc   : > { %v3217_v29 = vpop.eup %3216  ;;  %3228 = vpow2.f32 %v2466_v10  ;;  %v2505_v6 = vand.u32 2147483647, %v3215_v45  ;;  %v2495_v20 = vmul.f32 %v3211_v44, %v2494_v54  ;;  %vm4023_vm7 = vcmp.lt.f32.partialorder %v2478_v58, 0.0004427343 }
 0xecd   : > { %3230 = vlog2.f32 %v2499_v46  ;;  %v2481_v37 = vadd.f32 1.0, %v3217_v29  ;;  %v2484_v1 = vmul.f32 -0.5, %v3217_v29  ;;  %v2503_v39 = vadd.f32 1.0, %v2502_v13 }
 0xece   : > { %v2487_v17 = vand.u32 2147483647, %v3217_v29  ;;  %v2477_v63 = vmul.f32 %v3213_v4, %v2476_v60  ;;  %vm4031_vm8 = vcmp.lt.f32.partialorder %v2505_v6, 0.0004427343 }
 0xecf   : > { %3232 = vlog2.f32 %v2481_v37  ;;  %v2485_v23 = vadd.f32 1.0, %v2484_v1  ;;  %v2504_v37 = vmul.f32 %v3215_v45, %v2503_v39 }
 0xed0   : > { %vm4044_vm9 = vcmp.lt.f32.partialorder %v2487_v17, 0.0004427343 }
 0xed1   : > { %v4008_v40 = vpop.eup %3218  ;;  %v2486_v58 = vmul.f32 %v3217_v29, %v2485_v23  ;;  %v2412_v23 = vmax.f32 %v3986_v2, 0.0 }
 0xed2   : > { %v2526_v21 = vadd.f32 1.0, %v4008_v40  ;;  %v2529_v33 = vmul.f32 -0.5, %v4008_v40  ;;  %v2532_v45 = vand.u32 2147483647, %v4008_v40 }
 0xed3   : > { %v4010_v32 = vpop.eup %3220 }
 0xed4   : > { %v2508_v59 = vadd.f32 1.0, %v4010_v32  ;;  %3234 = vlog2.f32 %v2526_v21  ;;  %v2511_v38 = vmul.f32 -0.5, %v4010_v32  ;;  %v2530_v29 = vadd.f32 1.0, %v2529_v33 }
 0xed5   : > { %vm4077_vm12 = vcmp.lt.f32.partialorder %v2532_v45, 0.0004427343 }
 0xed6   : > { %v3223_v5 = vpop.eup %3222  ;;  %3236 = vlog2.f32 %v2508_v59  ;;  %v2531_v43 = vmul.f32 %v4008_v40, %v2530_v29 }
 0xed7   : > { %v4021_v52 = vpop.eup %3224  ;;  %v2492_v12 = vmul.f32 0.6931472, %v3223_v5  ;;  %v2512_v5 = vadd.f32 1.0, %v2511_v38 }
 0xed8   : > { %v3227_v14 = vpop.eup %3226  ;;  %v2535_v19 = vadd.f32 1.0, %v4021_v52  ;;  %v2538_v27 = vmul.f32 -0.5, %v4021_v52 }
 0xed9   : > { %v2498_v41 = vsel %vm2497_vm6, %v2495_v20, %v2492_v12  ;;  %v2474_v42 = vmul.f32 0.6931472, %v3227_v14  ;;  %v4029_v49 = vpop.eup %3228  ;;  %v2514_v12 = vand.u32 2147483647, %v4010_v32 }
 0xeda   : > { %v2546_v24 = vadd.f32 %v2498_v41, %v2410_v48  ;;  %3238 = vlog2.f32 %v2535_v19  ;;  %v3231_v10 = vpop.eup %3230  ;;  %v2517_v4 = vadd.f32 1.0, %v4029_v49  ;;  %v2520_v17 = vmul.f32 -0.5, %v4029_v49 }
 0xedb   : > { %v2480_v46 = vsel %vm4023_vm7, %v2477_v63, %v2474_v42  ;;  %v2501_v55 = vmul.f32 0.6931472, %v3231_v10  ;;  %v2539_v42 = vadd.f32 1.0, %v2538_v27  ;;  %vm2515_vm13 = vcmp.lt.f32.partialorder %v2514_v12, 0.0004427343 }
 0xedc   : > { %v2554_v31 = vsel %vm2426_vm4, %v3960_v18, %v2546_v24  ;;  %v2544_v54 = vadd.f32 %v2480_v46, %v2408_v50  ;;  %v3233_v21 = vpop.eup %3232  ;;  %3240 = vlog2.f32 %v2517_v4  ;;  %v2541_v24 = vand.u32 2147483647, %v4021_v52 }
 0xedd   : > { %v2562_v48 = vsub.f32 0.0, %v2554_v31  ;;  %v2507_v26 = vsel %vm4031_vm8, %v2504_v37, %v2501_v55  ;;  %v2483_v59 = vmul.f32 0.6931472, %v3233_v21  ;;  %v2521_v10 = vadd.f32 1.0, %v2520_v17 }
 0xede   : > { %v2552_v18 = vsel %vm2424_vm5, %v3965_v22, %v2544_v54  ;;  %v2547_v1 = vadd.f32 %v2507_v26, %v2411_v28  ;;  %v2540_v38 = vmul.f32 %v4021_v52, %v2539_v42  ;;  %vm2542_vm1 = vcmp.lt.f32.partialorder %v2541_v24, 0.0004427343 }
 0xedf   : > { %v2570_v50 = vadd.f32 %v2562_v48, %v3849_v36  ;;  %v2560_v60 = vsub.f32 0.0, %v2552_v18  ;;  %v2489_v22 = vsel %vm4044_vm9, %v2486_v58, %v2483_v59  ;;  %v2522_v52 = vmul.f32 %v4029_v49, %v2521_v10 }
 0xee0   : > { %v2555_v36 = vsel %vm2427_vm10, %v3971_v35, %v2547_v1  ;;  %v2545_v28 = vadd.f32 %v2489_v22, %v2409_v15  ;;  %v2513_v15 = vmul.f32 %v4010_v32, %v2512_v5  ;;  %vm2429_vm4 = vcmp.ne.f32.partialorder %v4005_v57, %v4005_v57 }
 0xee1   : > { %2578 = vst.msk [vmem:[%s4054_s16 + $0x10] sm:$0xff] %vm398_vm0, %v2570_v50  ;;  %v2568_v6 = vadd.f32 %v2560_v60, %v3846_v61  ;;  %v3235_v20 = vpop.eup %3234  ;;  %v2563_v39 = vsub.f32 0.0, %v2555_v36 }
 0xee2   : > { %v2553_v61 = vsel %vm2425_vm11, %v3977_v53, %v2545_v28  ;;  %v2528_v35 = vmul.f32 0.6931472, %v3235_v20 }
 0xee3   : > { %v3237_v0 = vpop.eup %3236  ;;  %2576 = vst.msk [vmem:[%s4054_s16] sm:$0xff] %vm398_vm0, %v2568_v6  ;;  %v2571_v19 = vadd.f32 %v2563_v39, %v3857_v11  ;;  %v2561_v41 = vsub.f32 0.0, %v2553_v61 }
 0xee4   : > { %v2510_v40 = vmul.f32 0.6931472, %v3237_v0  ;;  %v2534_v63 = vsel %vm4077_vm12, %v2531_v43, %v2528_v35 }
 0xee5   : > { %2579 = vst.msk [vmem:[%s4054_s16 + $0x18] sm:$0xff] %vm398_vm0, %v2571_v19  ;;  %v2569_v53 = vadd.f32 %v2561_v41, %v3854_v8  ;;  %v2550_v32 = vadd.f32 %v2534_v63, %v2414_v3  ;;  %v2523_v8 = vand.u32 2147483647, %v4029_v49 }
 0xee6   : > { %v2516_v44 = vsel %vm2515_vm13, %v2513_v15, %v2510_v40 }
 0xee7   : > { %v3239_v33 = vpop.eup %3238  ;;  %v2548_v11 = vadd.f32 %v2516_v44, %v2412_v23  ;;  %2577 = vst.msk [vmem:[%s4054_s16 + $0x8] sm:$0xff] %vm398_vm0, %v2569_v53  ;;  %v2558_v46 = vsel %vm2430_vm14, %v3984_v62, %v2550_v32  ;;  %vm2524_vm3 = vcmp.lt.f32.partialorder %v2523_v8, 0.0004427343 }
 0xee8   : > { %v2537_v37 = vmul.f32 0.6931472, %v3239_v33  ;;  %v2566_v4 = vsub.f32 0.0, %v2558_v46 }
 0xee9   : > { %v2556_v31 = vsel %vm2428_vm15, %v3986_v2, %v2548_v11  ;;  %v3241_v30 = vpop.eup %3240  ;;  %v2413_v2 = vmax.f32 %v4001_v47, 0.0 }
 0xeea   : > { %v2564_v54 = vsub.f32 0.0, %v2556_v31  ;;  %v2543_v55 = vsel %vm2542_vm1, %v2540_v38, %v2537_v37  ;;  %v2574_v13 = vadd.f32 %v2566_v4, %v3871_v51  ;;  %v2519_v62 = vmul.f32 0.6931472, %v3241_v30 }
 0xeeb   : > { %v2551_v21 = vadd.f32 %v2543_v55, %v2415_v9 }
 0xeec   : > { %v2572_v48 = vadd.f32 %v2564_v54, %v3866_v34  ;;  %2582 = vst.msk [vmem:[%s4054_s16 + $0x30] sm:$0xff] %vm398_vm0, %v2574_v13  ;;  %v2525_v45 = vsel %vm2524_vm3, %v2522_v52, %v2519_v62 }
 0xeed   : > { %v2559_v58 = vsel %vm2431_vm2, %v3995_v7, %v2551_v21  ;;  %v2549_v18 = vadd.f32 %v2525_v45, %v2413_v2 }
 0xeee   : > { %2580 = vst.msk [vmem:[%s4054_s16 + $0x20] sm:$0xff] %vm398_vm0, %v2572_v48  ;;  %v2567_v51 = vsub.f32 0.0, %v2559_v58 }
 0xeef   : > { %v2557_v49 = vsel %vm2429_vm4, %v4001_v47, %v2549_v18 }
 0xef0   : > { %v2575_v34 = vadd.f32 %v2567_v51, %v3877_v25  ;;  %v2565_v56 = vsub.f32 0.0, %v2557_v49 }
 0xef2   : > { %2583 = vst.msk [vmem:[%s4054_s16 + $0x38] sm:$0xff] %vm398_vm0, %v2575_v34  ;;  %v2573_v26 = vadd.f32 %v2565_v56, %v3874_v16 }
 0xef4   : > { %2581 = vst.msk [vmem:[%s4054_s16 + $0x28] sm:$0xff] %vm398_vm0, %v2573_v26 }
 0xef5 PF: > { %s21_s17 = sadd.s32 1, %s3256_s17  }
 0xef6   : > { %p18_p4 = scmp.ge.s32.totalorder %s21_s17, 4  }
 0xef8   :  { %20 = sbr.rel (!%p18_p4) target bundleno = 1 (0x1), region = 94 }

</bundles_post_ra>
